<compile_context>
chip_gen: v5e
topology: v5e:2x2
jax: 0.10.0
libtpu: 0.0.40
codegen_flags: <defaults>
</compile_context>

<pallas_src>
import jax
import jax.numpy as jnp
from jax.experimental import pallas as pl
from jax.experimental.pallas import tpu as pltpu


def _max_kernel(x_ref, y_ref, o_ref):
    # Elementwise max over the full VMEM tile (hot path).
    o_ref[...] = jnp.maximum(x_ref[...], y_ref[...])


_LANE_CANDIDATES = (4096, 2048, 1024, 512, 256, 128)  # lane-dense widths
_MIN_PALLAS_BYTES = 1 * 1024 * 1024  # below this, plain jnp.maximum wins


def _device_is_v7x():
    try:
        kind = jax.devices()[0].device_kind.lower()
    except Exception:
        return False
    return ("v7" in kind) or ("7x" in kind)


def _pick_tile_r(rows, lane_w, itemsize, target_bytes, min_steps):
    """Pick a row-tile: dtype-aware sublane multiple, ~target bytes/buffer,
    >= min_steps grid steps, preferring an exact divisor of rows."""
    pack = max(1, 4 // itemsize)   # rows packed per sublane for sub-32-bit dtypes
    sub = 8 * pack                 # 8 (f32) / 16 (bf16,f16) / 32 (int8,fp8)
    budget = max(sub, (target_bytes // (lane_w * itemsize)) // sub * sub)
    cap = max(sub, (rows // min_steps) // sub * sub)   # ensure >= min_steps steps
    t = min(budget, cap, rows)
    t = max(sub, t // sub * sub)
    # Prefer an exact divisor of rows (removes the ragged masked-tail block).
    for cand in range(t, sub - 1, -sub):
        if rows % cand == 0:
            return cand
    return t  # ragged tail; Pallas masks it correctly


def max_pooling(x, y, *, donate_x=False):
    """Elementwise max of x and y (== torch.stack((x, y), 1).max(1)[0])."""
    assert x.shape == y.shape and x.dtype == y.dtype
    orig_shape = x.shape
    total = 1
    for d in orig_shape:
        total *= d
    itemsize = jnp.dtype(x.dtype).itemsize

    # Tiny or 128-unfriendly sizes: dispatch to XLA's fused elementwise max.
    if total * itemsize < _MIN_PALLAS_BYTES or total % 128 != 0:
        return jnp.maximum(x, y)

    # Lane-dense flatten: 1-D element stream -> (rows, lane_w).
    lane_w = next(w for w in _LANE_CANDIDATES if total % w == 0)
    rows = total // lane_w
    x2 = x.reshape(rows, lane_w)
    y2 = y.reshape(rows, lane_w)

    if _device_is_v7x():
        target_tile_bytes = 6 * 1024 * 1024   # 6 live buffers -> 36 MiB < 64 MiB VMEM
        min_steps = 8                         # >= 4 steps per TensorCore
        semantics = (pltpu.CORE_PARALLEL,)    # actually shard across the 2 TCs
        vmem_limit = 48 * 1024 * 1024
    else:
        target_tile_bytes = 4 * 1024 * 1024   # 6 live buffers -> 24 MiB
        min_steps = 4
        semantics = ("parallel",)
        vmem_limit = 32 * 1024 * 1024         # > v5e's 16 MiB default scoped VMEM

    tile_r = _pick_tile_r(rows, lane_w, itemsize, target_tile_bytes, min_steps)
    grid = (pl.cdiv(rows, tile_r),)

    out2 = pl.pallas_call(
        _max_kernel,
        out_shape=jax.ShapeDtypeStruct((rows, lane_w), x.dtype),
        grid=grid,
        in_specs=[
            pl.BlockSpec((tile_r, lane_w), lambda i: (i, 0)),
            pl.BlockSpec((tile_r, lane_w), lambda i: (i, 0)),
        ],
        out_specs=pl.BlockSpec((tile_r, lane_w), lambda i: (i, 0)),
        compiler_params=pltpu.CompilerParams(
            dimension_semantics=semantics,
            vmem_limit_bytes=vmem_limit,
        ),
        cost_estimate=pl.CostEstimate(
            flops=total,
            transcendentals=0,
            bytes_accessed=3 * total * itemsize,
        ),
        input_output_aliases=({0: 0} if donate_x else {}),
    )(x2, y2)

    return out2.reshape(orig_shape)


if __name__ == "__main__":
    key = jax.random.PRNGKey(0)

    # 1) Module-sized demo input (NCHW: batch=2, channels=4, 16x16). Tiny
    #    (8 KiB), so the wrapper dispatches to the fused XLA path.
    kx, ky = jax.random.split(key)
    x_small = jax.random.normal(kx, (2, 4, 16, 16), dtype=jnp.float32)
    y_small = jax.random.normal(ky, (2, 4, 16, 16), dtype=jnp.float32)
    out_small = max_pooling(x_small, y_small)
    jax.block_until_ready(out_small)
    ref_small = jnp.max(jnp.stack((x_small, y_small), axis=1), axis=1)
    assert out_small.shape == ref_small.shape == (2, 4, 16, 16)
    assert jnp.allclose(out_small, ref_small)

    # 2) Larger NCHW f32 input exercising the tiled, pipelined Pallas path
    #    (lane_w=4096, rows=256 -> >=4-step grid with an exact-divisor tile).
    kx2, ky2 = jax.random.split(jax.random.PRNGKey(1))
    x_big = jax.random.normal(kx2, (8, 16, 64, 128), dtype=jnp.float32)
    y_big = jax.random.normal(ky2, (8, 16, 64, 128), dtype=jnp.float32)
    out_big = max_pooling(x_big, y_big)
    jax.block_until_ready(out_big)
    assert out_big.shape == x_big.shape
    assert jnp.array_equal(out_big, jnp.maximum(x_big, y_big))

    # 3) bf16 input — exercises dtype-aware sublane rounding (tile_r % 16 == 0).
    x_bf = x_big.astype(jnp.bfloat16)
    y_bf = y_big.astype(jnp.bfloat16)
    out_bf = max_pooling(x_bf, y_bf)
    jax.block_until_ready(out_bf)
    assert out_bf.dtype == jnp.bfloat16
    assert jnp.array_equal(out_bf, jnp.maximum(x_bf, y_bf))

    print("KERNEL_OK")
</pallas_src>

<mosaic_0001>
module attributes {stable_mosaic.version = 11 : i64} {
  func.func @_max_kernel(%arg0: i32, %arg1: memref<64x4096xf32, #tpu.memory_space<vmem>>, %arg2: memref<64x4096xf32, #tpu.memory_space<vmem>>, %arg3: memref<64x4096xf32, #tpu.memory_space<vmem>>) attributes {dimension_semantics = [#tpu.dimension_semantics<parallel>], iteration_bounds = array<i64: 4>, scalar_prefetch = 0 : i64, scratch_operands = 0 : i64, tpu.core_type = #tpu.core_type<tc>, window_params = [{transform_indices = @transform_0, window_bounds = array<i64: 64, 4096>}, {transform_indices = @transform_1, window_bounds = array<i64: 64, 4096>}, {transform_indices = @transform_2, window_bounds = array<i64: 64, 4096>}]} {
    %c0 = arith.constant 0 : index
    %c0_0 = arith.constant 0 : index
    %0 = vector.load %arg1[%c0, %c0_0] : memref<64x4096xf32, #tpu.memory_space<vmem>>, vector<64x4096xf32>
    %c0_1 = arith.constant 0 : index
    %c0_2 = arith.constant 0 : index
    %1 = vector.load %arg2[%c0_1, %c0_2] : memref<64x4096xf32, #tpu.memory_space<vmem>>, vector<64x4096xf32>
    %2 = arith.maximumf %0, %1 : vector<64x4096xf32>
    %c0_3 = arith.constant 0 : index
    %c0_4 = arith.constant 0 : index
    %3 = vector.load %arg3[%c0_3, %c0_4] : memref<64x4096xf32, #tpu.memory_space<vmem>>, vector<64x4096xf32>
    tpu.vector_store %arg3[%c0_3, %c0_4], %2 {strides = array<i32>} : memref<64x4096xf32, #tpu.memory_space<vmem>>, vector<64x4096xf32>,
    return
  }
  func.func @transform_0(%arg0: i32) -> (i32, i32) {
    %c0_i32 = arith.constant 0 : i32
    %c0_i32_0 = arith.constant 0 : i32
    return %arg0, %c0_i32 : i32, i32
  }
  func.func @transform_1(%arg0: i32) -> (i32, i32) {
    %c0_i32 = arith.constant 0 : i32
    %c0_i32_0 = arith.constant 0 : i32
    return %arg0, %c0_i32 : i32, i32
  }
  func.func @transform_2(%arg0: i32) -> (i32, i32) {
    %c0_i32 = arith.constant 0 : i32
    %c0_i32_0 = arith.constant 0 : i32
    return %arg0, %c0_i32 : i32, i32
  }
}

</mosaic_0001>

<bundles_post_ra>
// kernel: tpu_custom_call.1
= control target key start
LH: loop header
LB: loop body
LE: loop exit
PB: predicated region body
PF: predicated region fallthrough
CT: control target
= control target key end

     0   :  { %7 = vsyncpa [#allocation3], 0  ;;  %s2522_s0 = inlined_call_operand.hbm [shape: f32[256,4096], index: 0, kind: input, shape index: {}]   ;;  %s2523_s1 = inlined_call_operand.hbm [shape: f32[256,4096], index: 1, kind: input, shape index: {}]   ;;  %s2524_s2 = inlined_call_operand.hbm [shape: f32[256,4096], index: 2, kind: output, shape index: {}]  }
   0x1   :  { %9 = vsyncpa [#allocation3 + $0x1], 0 }
   0x2   :  { %10 = vsyncpa [#allocation6], 0 }
   0x3   :  { %12 = vsyncpa [#allocation6 + $0x1], 0 }
   0x4   :  { %13 = vsyncpa [#allocation4], 0 }
   0x5   :  { %15 = vsyncpa [#allocation4 + $0x1], 0  ;;  %s1581_s9 = smov 0   ;;  %s1583_s10 = smov 0  }
   0x6   :  { %s1585_s11 = smov 0   ;;  %s1587_s12 = smov 0  }
   0x7 LB: > { %s1602_s13 = sadd.s32 4294967295, %s1560_s12   ;;  %s1348_s14 = sadd.s32 4294967294, %s1560_s12   ;;  %s1560_s12 = sphi %s1587_s12, %s2534_s12   ;;  %s1556_s11 = sphi %s1585_s11, %s2533_s11   ;;  %s1552_s10 = sphi %s1583_s10, %s2532_s10   ;;  %s1548_s9 = sphi %s1581_s9, %s2531_s9  }
   0x8   : > { %s1606_s15 = sadd.s32 1, %s1560_s12   ;;  %s28_s16 = sadd.s32 1, %s1556_s11 }
   0x9   : > { %s25_s17 = ssub.s32 %s1560_s12, %s1606_s15  ;;  %p35_p0 = scmp.ne.s32.totalorder %s1556_s11, %s1552_s10 }
   0xa   : > { %p26_p1 = scmp.eq.s32.totalorder %s25_s17, 0  ;;  %p36_p2 = scmp.eq.s32.totalorder %s1560_s12, 0 }
   0xb   : > { %p41_p3 = scmp.ne.s32.totalorder %s1552_s10, %s1548_s9  ;;  %p42_p4 = scmp.eq.s32.totalorder %s1602_s13, 0 }
   0xc   : > { %s1618_s18 = scalar_select %p26_p1, %s1556_s11, %s28_s16  }
   0xd   : > { %p1620_p5 = por %p36_p2, %p35_p0  ;;  %p1624_p6 = por %p42_p4, %p41_p3 }
   0xe   : > { %p91_p7 = scmp.eq.s32.totalorder %s1602_s13, 3  ;;  %p97_p8 = scmp.eq.s32.totalorder %s1348_s14, 3 }
   0xf   : > { %p1392_p9 = scmp.lt.s32.totalorder %s1560_s12, 4  ;;  %s1639_s23 = sand.u32 1, %s1556_s11  }
  0x10   : > { %p1630_p10 = por %p91_p7, %p35_p0  ;;  %p1634_p11 = por %p97_p8, %p41_p3 }
  0x11   : > { %s1370_s24 = sshll.u32 %s1560_s12, 11  ;;  %s1351_s25 = sshll.u32 %s1639_s23, 11 }
  0x12   : > { %s127_s28 = scalar_lea.hbm %s2522_s0, %s1370_s24  ;;  %s121_s30 = scalar_lea.vmem [#allocation2], %s1351_s25 }
  0x13   : > { %s128_s29 = sshll.u32 %s127_s28, 4  ;;  %s130_s3 = sshll.u32 %s121_s30, 4  ;;  %s129_s29 = int_to_ptr.hbm [resolvable:$true] %s128_s29  ;;  %s131_s3 = int_to_ptr.vmem [resolvable:$true] %s130_s3 }
  0x14   : > { %p1652_p12 = pnand %p1392_p9, %p1620_p5  ;;  %p1359_p13 = scmp.ge.s32.totalorder %s1560_s12, 1 }
  0x15   : > { %p161_p0 = scmp.lt.s32.totalorder %s1560_s12, 5  ;;  %s118_s5 = scalar_lea.sflag [#allocation3], %s1639_s23 }
  0x16   : > { %s1430_s6 = sshra.s32 %s129_s29, 4  ;;  %p1434_p2 = pneg %p1652_p12  ;;  %s1431_s6 = int_to_ptr.hbm [resolvable:$true] %s1430_s6 }
  0x17   : > { %s1432_s7 = scalar_lea.hbm %s1431_s6, 2048  ;;  %s1437_s16 = scalar_lea.hbm %s2522_s0, 8192 }
  0x18   : > { %p1433_p1 = scmp.ne.s32.totalorder %s1431_s6, %s1432_s7  ;;  %p1438_p5 = scmp.lt.s32.totalorder %s1431_s6, %s2522_s0 }
  0x19   : > { %p1439_p7 = scmp.lt.s32.totalorder %s1437_s16, %s1432_s7 }
  0x1a   : > { %p1435_p3 = pnand %p1434_p2, %p1433_p1 }
  0x1b   : > { %p1440_p8 = por %p1439_p7, %p1438_p5 }
  0x1c   : > { %p1436_p4 = pneg %p1435_p3 }
  0x1e   : > { %p1441_p9 = pnand %p1440_p8, %p1436_p4 }
  0x20   : > { %1444 = shalt.err (!%p1441_p9)
}
  0x21   : > { %s1562_s26 = smov 4096   ;;  %s1563_s27 = smov 256  }
  0x22   : > { %1384 = dma.hbm_to_vmem [thread:$0]  (!%p1652_p12), %s129_s29, 32768, %s131_s3, %s118_s5, %s1562_s26, %s1562_s26, %s1563_s27  }
  0x23   : > { %p1676_p1 = pnand %p1359_p13, %p161_p0  ;;  %s150_s7 = scalar_lea.hbm %s2523_s1, %s1370_s24 }
  0x24   : > { %s151_s8 = sshll.u32 %s150_s7, 4  ;;  %s144_s14 = scalar_lea.vmem [#allocation5], %s1351_s25  ;;  %s152_s8 = int_to_ptr.hbm [resolvable:$true] %s151_s8 }
  0x25   : > { %s153_s16 = sshll.u32 %s144_s14, 4  ;;  %s141_s17 = scalar_lea.sflag [#allocation6], %s1639_s23  ;;  %s154_s16 = int_to_ptr.vmem [resolvable:$true] %s153_s16 }
  0x26   : > { %s1460_s19 = sshra.s32 %s152_s8, 4  ;;  %s1467_s30 = scalar_lea.hbm %s2523_s1, 8192  ;;  %s1461_s19 = int_to_ptr.hbm [resolvable:$true] %s1460_s19 }
  0x27   : > { %s1462_s29 = scalar_lea.hbm %s1461_s19, 2048  ;;  %p1468_p4 = scmp.lt.s32.totalorder %s1461_s19, %s2523_s1 }
  0x28   : > { %p1463_p3 = scmp.ne.s32.totalorder %s1461_s19, %s1462_s29  ;;  %p1469_p5 = scmp.lt.s32.totalorder %s1467_s30, %s1462_s29 }
  0x2a   : > { %p1465_p13 = pnand %p1463_p3, %p1434_p2  ;;  %p1470_p7 = por %p1469_p5, %p1468_p4 }
  0x2c   : > { %p1466_p0 = pneg %p1465_p13 }
  0x2e   : > { %p1471_p8 = pnand %p1470_p7, %p1466_p0 }
  0x30   : > { %1474 = shalt.err (!%p1471_p8)
}
  0x31   : > { %1387 = dma.hbm_to_vmem [thread:$0]  (!%p1652_p12), %s152_s8, 32768, %s154_s16, %s141_s17, %s1562_s26, %s1562_s26, %s1563_s27  }
  0x32   : > { %165 = sbr.rel (%p1676_p1) target bundleno = 321 (0x141), region = 28  ;;  %s1702_s23 = sand.u32 (!%p1676_p1), 1, %s1552_s10  }
  0x33   : > { %s1360_s25 = sshll.u32 (!%p1676_p1), %s1702_s23, 11  ;;  %s168_s7 = scalar_lea.sflag (!%p1676_p1), [#allocation3], %s1702_s23 }
  0x34   : > { %s1706_s14 = scalar_lea.vmem (!%p1676_p1), [#allocation2], %s1360_s25 }
  0x37   : > { %1535 = dma.done.wait (%p1624_p6), %s168_s7, 32768  }
  0x38   : > { %1537 = vsyncadd (%p1624_p6), %s168_s7, 4294934528  ;;  %s178_s4 = scalar_lea.sflag [#allocation6], %s1702_s23  ;;  %s1713_s26 = scalar_lea.vmem [#allocation5], %s1360_s25 }
  0x39   : > { %1539 = dma.done.wait (%p1624_p6), %s178_s4, 32768  }
  0x3a   : > { %1541 = vsyncadd (%p1624_p6), %s178_s4, 4294934528  ;;  %v211_v0 = vld [vmem:[%s1706_s14] sm:$0xff]  ;;  %v212_v2 = vld [vmem:[%s1706_s14 + $0x8] sm:$0xff]  ;;  %s1728_s20 = scalar_lea.vmem [#allocation7], %s1360_s25  ;;  %s1374_s27 = sshll.u32 %s1602_s13, 11 }
  0x3b   : > { %v467_v1 = vld [vmem:[%s1713_s26] sm:$0xff]  ;;  %v468_v4 = vld [vmem:[%s1713_s26 + $0x8] sm:$0xff]  ;;  %v213_v5 = vld [vmem:[%s1706_s14 + $0x10] sm:$0xff]  ;;  %s1248_s8 = scalar_lea.hbm %s2524_s2, %s1374_s27  ;;  %s1249_s16 = sshll.u32 %s1728_s20, 4  ;;  %s1250_s16 = int_to_ptr.vmem [resolvable:$true] %s1249_s16 }
  0x3c   : > { %v723_v3 = vmax.f32 %v211_v0, %v467_v1  ;;  %v469_v6 = vld [vmem:[%s1713_s26 + $0x10] sm:$0xff]  ;;  %v724_v7 = vmax.f32 %v212_v2, %v468_v4  ;;  %v214_v9 = vld [vmem:[%s1706_s14 + $0x18] sm:$0xff]  ;;  %v215_v11 = vld [vmem:[%s1706_s14 + $0x20] sm:$0xff]  ;;  %s1251_s17 = sshll.u32 %s1248_s8, 4  ;;  %s1236_s19 = scalar_lea.sflag [#allocation4], %s1702_s23  ;;  %s1252_s17 = int_to_ptr.hbm [resolvable:$true] %s1251_s17 }
  0x3d   : > { %v725_v8 = vmax.f32 %v213_v5, %v469_v6  ;;  %v470_v10 = vld [vmem:[%s1713_s26 + $0x18] sm:$0xff]  ;;  %v471_v13 = vld [vmem:[%s1713_s26 + $0x20] sm:$0xff]  ;;  %v216_v14 = vld [vmem:[%s1706_s14 + $0x28] sm:$0xff]  ;;  %s1504_s29 = sshra.s32 %s1252_s17, 4  ;;  %s1510_s24 = scalar_lea.hbm %s2524_s2, 8192  ;;  %s1505_s29 = int_to_ptr.hbm [resolvable:$true] %s1504_s29 }
  0x3e   : > { %979 = vst [vmem:[%s1728_s20] sm:$0xff] %v723_v3  ;;  %v726_v12 = vmax.f32 %v214_v9, %v470_v10  ;;  %v472_v15 = vld [vmem:[%s1713_s26 + $0x28] sm:$0xff]  ;;  %v727_v16 = vmax.f32 %v215_v11, %v471_v13  ;;  %v217_v18 = vld [vmem:[%s1706_s14 + $0x30] sm:$0xff]  ;;  %v218_v20 = vld [vmem:[%s1706_s14 + $0x38] sm:$0xff]  ;;  %s1506_s3 = scalar_lea.hbm %s1505_s29, 2048  ;;  %p1511_p9 = scmp.lt.s32.totalorder %s1505_s29, %s2524_s2 }
  0x3f   : > { %980 = vst [vmem:[%s1728_s20 + $0x8] sm:$0xff] %v724_v7  ;;  %v728_v17 = vmax.f32 %v216_v14, %v472_v15  ;;  %v473_v19 = vld [vmem:[%s1713_s26 + $0x30] sm:$0xff]  ;;  %v474_v22 = vld [vmem:[%s1713_s26 + $0x38] sm:$0xff]  ;;  %v219_v23 = vld [vmem:[%s1706_s14 + $0x40] sm:$0xff]  ;;  %p1507_p6 = scmp.ne.s32.totalorder %s1505_s29, %s1506_s3  ;;  %p1512_p1 = scmp.lt.s32.totalorder %s1510_s24, %s1506_s3 }
  0x40   : > { %981 = vst [vmem:[%s1728_s20 + $0x10] sm:$0xff] %v725_v8  ;;  %v729_v21 = vmax.f32 %v217_v18, %v473_v19  ;;  %v475_v24 = vld [vmem:[%s1713_s26 + $0x40] sm:$0xff]  ;;  %v730_v25 = vmax.f32 %v218_v20, %v474_v22  ;;  %v220_v26 = vld [vmem:[%s1706_s14 + $0x48] sm:$0xff]  ;;  %v221_v28 = vld [vmem:[%s1706_s14 + $0x50] sm:$0xff] }
  0x41   : > { %982 = vst [vmem:[%s1728_s20 + $0x18] sm:$0xff] %v726_v12  ;;  %v476_v27 = vld [vmem:[%s1713_s26 + $0x48] sm:$0xff]  ;;  %v731_v29 = vmax.f32 %v219_v23, %v475_v24  ;;  %v477_v30 = vld [vmem:[%s1713_s26 + $0x50] sm:$0xff]  ;;  %v222_v31 = vld [vmem:[%s1706_s14 + $0x58] sm:$0xff]  ;;  %p1508_p12 = pnand %p1507_p6, %p1630_p10  ;;  %p1513_p3 = por %p1512_p1, %p1511_p9 }
  0x42   : > { %983 = vst [vmem:[%s1728_s20 + $0x20] sm:$0xff] %v727_v16  ;;  %v478_v32 = vld [vmem:[%s1713_s26 + $0x58] sm:$0xff]  ;;  %v732_v33 = vmax.f32 %v220_v26, %v476_v27  ;;  %v223_v34 = vld [vmem:[%s1706_s14 + $0x60] sm:$0xff]  ;;  %v733_v36 = vmax.f32 %v221_v28, %v477_v30  ;;  %v224_v37 = vld [vmem:[%s1706_s14 + $0x68] sm:$0xff] }
  0x43   : > { %984 = vst [vmem:[%s1728_s20 + $0x28] sm:$0xff] %v728_v17  ;;  %v479_v35 = vld [vmem:[%s1713_s26 + $0x60] sm:$0xff]  ;;  %v480_v38 = vld [vmem:[%s1713_s26 + $0x68] sm:$0xff]  ;;  %v734_v39 = vmax.f32 %v222_v31, %v478_v32  ;;  %v225_v40 = vld [vmem:[%s1706_s14 + $0x70] sm:$0xff]  ;;  %p1509_p2 = pneg %p1508_p12 }
  0x44   : > { %985 = vst [vmem:[%s1728_s20 + $0x30] sm:$0xff] %v729_v21  ;;  %v481_v41 = vld [vmem:[%s1713_s26 + $0x70] sm:$0xff]  ;;  %v735_v42 = vmax.f32 %v223_v34, %v479_v35  ;;  %v226_v43 = vld [vmem:[%s1706_s14 + $0x78] sm:$0xff]  ;;  %v736_v45 = vmax.f32 %v224_v37, %v480_v38  ;;  %v227_v46 = vld [vmem:[%s1706_s14 + $0x80] sm:$0xff] }
  0x45   : > { %986 = vst [vmem:[%s1728_s20 + $0x38] sm:$0xff] %v730_v25  ;;  %v482_v44 = vld [vmem:[%s1713_s26 + $0x78] sm:$0xff]  ;;  %v483_v47 = vld [vmem:[%s1713_s26 + $0x80] sm:$0xff]  ;;  %v737_v48 = vmax.f32 %v225_v40, %v481_v41  ;;  %v228_v49 = vld [vmem:[%s1706_s14 + $0x88] sm:$0xff]  ;;  %p1514_p13 = pnand %p1513_p3, %p1509_p2 }
  0x46   : > { %987 = vst [vmem:[%s1728_s20 + $0x40] sm:$0xff] %v731_v29  ;;  %v484_v50 = vld [vmem:[%s1713_s26 + $0x88] sm:$0xff]  ;;  %v738_v51 = vmax.f32 %v226_v43, %v482_v44  ;;  %v229_v52 = vld [vmem:[%s1706_s14 + $0x90] sm:$0xff]  ;;  %v739_v54 = vmax.f32 %v227_v46, %v483_v47  ;;  %v230_v55 = vld [vmem:[%s1706_s14 + $0x98] sm:$0xff] }
  0x47   : > { %988 = vst [vmem:[%s1728_s20 + $0x48] sm:$0xff] %v732_v33  ;;  %v485_v53 = vld [vmem:[%s1713_s26 + $0x90] sm:$0xff]  ;;  %v486_v56 = vld [vmem:[%s1713_s26 + $0x98] sm:$0xff]  ;;  %v740_v57 = vmax.f32 %v228_v49, %v484_v50  ;;  %v231_v58 = vld [vmem:[%s1706_s14 + $0xa0] sm:$0xff] }
  0x48   : > { %989 = vst [vmem:[%s1728_s20 + $0x50] sm:$0xff] %v733_v36  ;;  %v487_v59 = vld [vmem:[%s1713_s26 + $0xa0] sm:$0xff]  ;;  %v741_v60 = vmax.f32 %v229_v52, %v485_v53  ;;  %v232_v61 = vld [vmem:[%s1706_s14 + $0xa8] sm:$0xff]  ;;  %v742_v63 = vmax.f32 %v230_v55, %v486_v56  ;;  %v233_v0 = vld [vmem:[%s1706_s14 + $0xb0] sm:$0xff] }
  0x49   : > { %990 = vst [vmem:[%s1728_s20 + $0x58] sm:$0xff] %v734_v39  ;;  %v488_v62 = vld [vmem:[%s1713_s26 + $0xa8] sm:$0xff]  ;;  %v489_v1 = vld [vmem:[%s1713_s26 + $0xb0] sm:$0xff]  ;;  %v743_v2 = vmax.f32 %v231_v58, %v487_v59  ;;  %v234_v3 = vld [vmem:[%s1706_s14 + $0xb8] sm:$0xff] }
  0x4a   : > { %991 = vst [vmem:[%s1728_s20 + $0x60] sm:$0xff] %v735_v42  ;;  %v490_v4 = vld [vmem:[%s1713_s26 + $0xb8] sm:$0xff]  ;;  %v744_v5 = vmax.f32 %v232_v61, %v488_v62  ;;  %v235_v6 = vld [vmem:[%s1706_s14 + $0xc0] sm:$0xff]  ;;  %v745_v8 = vmax.f32 %v233_v0, %v489_v1  ;;  %v236_v9 = vld [vmem:[%s1706_s14 + $0xc8] sm:$0xff] }
  0x4b   : > { %992 = vst [vmem:[%s1728_s20 + $0x68] sm:$0xff] %v736_v45  ;;  %v491_v7 = vld [vmem:[%s1713_s26 + $0xc0] sm:$0xff]  ;;  %v492_v10 = vld [vmem:[%s1713_s26 + $0xc8] sm:$0xff]  ;;  %v746_v11 = vmax.f32 %v234_v3, %v490_v4  ;;  %v237_v12 = vld [vmem:[%s1706_s14 + $0xd0] sm:$0xff] }
  0x4c   : > { %993 = vst [vmem:[%s1728_s20 + $0x70] sm:$0xff] %v737_v48  ;;  %v493_v13 = vld [vmem:[%s1713_s26 + $0xd0] sm:$0xff]  ;;  %v747_v14 = vmax.f32 %v235_v6, %v491_v7  ;;  %v238_v15 = vld [vmem:[%s1706_s14 + $0xd8] sm:$0xff]  ;;  %v748_v17 = vmax.f32 %v236_v9, %v492_v10  ;;  %v239_v18 = vld [vmem:[%s1706_s14 + $0xe0] sm:$0xff] }
  0x4d   : > { %994 = vst [vmem:[%s1728_s20 + $0x78] sm:$0xff] %v738_v51  ;;  %v494_v16 = vld [vmem:[%s1713_s26 + $0xd8] sm:$0xff]  ;;  %v495_v19 = vld [vmem:[%s1713_s26 + $0xe0] sm:$0xff]  ;;  %v749_v20 = vmax.f32 %v237_v12, %v493_v13  ;;  %v240_v21 = vld [vmem:[%s1706_s14 + $0xe8] sm:$0xff] }
  0x4e   : > { %995 = vst [vmem:[%s1728_s20 + $0x80] sm:$0xff] %v739_v54  ;;  %v496_v22 = vld [vmem:[%s1713_s26 + $0xe8] sm:$0xff]  ;;  %v750_v23 = vmax.f32 %v238_v15, %v494_v16  ;;  %v241_v24 = vld [vmem:[%s1706_s14 + $0xf0] sm:$0xff]  ;;  %v751_v26 = vmax.f32 %v239_v18, %v495_v19  ;;  %v242_v27 = vld [vmem:[%s1706_s14 + $0xf8] sm:$0xff] }
  0x4f   : > { %996 = vst [vmem:[%s1728_s20 + $0x88] sm:$0xff] %v740_v57  ;;  %v497_v25 = vld [vmem:[%s1713_s26 + $0xf0] sm:$0xff]  ;;  %v498_v28 = vld [vmem:[%s1713_s26 + $0xf8] sm:$0xff]  ;;  %v752_v29 = vmax.f32 %v240_v21, %v496_v22  ;;  %v243_v30 = vld [vmem:[%s1706_s14 + $0x100] sm:$0xff] }
  0x50   : > { %997 = vst [vmem:[%s1728_s20 + $0x90] sm:$0xff] %v741_v60  ;;  %v499_v31 = vld [vmem:[%s1713_s26 + $0x100] sm:$0xff]  ;;  %v753_v32 = vmax.f32 %v241_v24, %v497_v25  ;;  %v244_v33 = vld [vmem:[%s1706_s14 + $0x108] sm:$0xff]  ;;  %v754_v35 = vmax.f32 %v242_v27, %v498_v28  ;;  %v245_v36 = vld [vmem:[%s1706_s14 + $0x110] sm:$0xff] }
  0x51   : > { %998 = vst [vmem:[%s1728_s20 + $0x98] sm:$0xff] %v742_v63  ;;  %v500_v34 = vld [vmem:[%s1713_s26 + $0x108] sm:$0xff]  ;;  %v501_v37 = vld [vmem:[%s1713_s26 + $0x110] sm:$0xff]  ;;  %v755_v38 = vmax.f32 %v243_v30, %v499_v31  ;;  %v246_v39 = vld [vmem:[%s1706_s14 + $0x118] sm:$0xff] }
  0x52   : > { %999 = vst [vmem:[%s1728_s20 + $0xa0] sm:$0xff] %v743_v2  ;;  %v502_v40 = vld [vmem:[%s1713_s26 + $0x118] sm:$0xff]  ;;  %v756_v41 = vmax.f32 %v244_v33, %v500_v34  ;;  %v247_v42 = vld [vmem:[%s1706_s14 + $0x120] sm:$0xff]  ;;  %v757_v44 = vmax.f32 %v245_v36, %v501_v37  ;;  %v248_v45 = vld [vmem:[%s1706_s14 + $0x128] sm:$0xff] }
  0x53   : > { %1000 = vst [vmem:[%s1728_s20 + $0xa8] sm:$0xff] %v744_v5  ;;  %v503_v43 = vld [vmem:[%s1713_s26 + $0x120] sm:$0xff]  ;;  %v504_v46 = vld [vmem:[%s1713_s26 + $0x128] sm:$0xff]  ;;  %v758_v47 = vmax.f32 %v246_v39, %v502_v40  ;;  %v249_v48 = vld [vmem:[%s1706_s14 + $0x130] sm:$0xff] }
  0x54   : > { %1001 = vst [vmem:[%s1728_s20 + $0xb0] sm:$0xff] %v745_v8  ;;  %v505_v49 = vld [vmem:[%s1713_s26 + $0x130] sm:$0xff]  ;;  %v759_v50 = vmax.f32 %v247_v42, %v503_v43  ;;  %v250_v51 = vld [vmem:[%s1706_s14 + $0x138] sm:$0xff]  ;;  %v760_v53 = vmax.f32 %v248_v45, %v504_v46  ;;  %v251_v54 = vld [vmem:[%s1706_s14 + $0x140] sm:$0xff] }
  0x55   : > { %1002 = vst [vmem:[%s1728_s20 + $0xb8] sm:$0xff] %v746_v11  ;;  %v506_v52 = vld [vmem:[%s1713_s26 + $0x138] sm:$0xff]  ;;  %v507_v55 = vld [vmem:[%s1713_s26 + $0x140] sm:$0xff]  ;;  %v761_v56 = vmax.f32 %v249_v48, %v505_v49  ;;  %v252_v57 = vld [vmem:[%s1706_s14 + $0x148] sm:$0xff] }
  0x56   : > { %1003 = vst [vmem:[%s1728_s20 + $0xc0] sm:$0xff] %v747_v14  ;;  %v508_v58 = vld [vmem:[%s1713_s26 + $0x148] sm:$0xff]  ;;  %v762_v59 = vmax.f32 %v250_v51, %v506_v52  ;;  %v253_v60 = vld [vmem:[%s1706_s14 + $0x150] sm:$0xff]  ;;  %v763_v62 = vmax.f32 %v251_v54, %v507_v55  ;;  %v254_v63 = vld [vmem:[%s1706_s14 + $0x158] sm:$0xff] }
  0x57   : > { %1004 = vst [vmem:[%s1728_s20 + $0xc8] sm:$0xff] %v748_v17  ;;  %v509_v61 = vld [vmem:[%s1713_s26 + $0x150] sm:$0xff]  ;;  %v510_v0 = vld [vmem:[%s1713_s26 + $0x158] sm:$0xff]  ;;  %v764_v1 = vmax.f32 %v252_v57, %v508_v58  ;;  %v255_v2 = vld [vmem:[%s1706_s14 + $0x160] sm:$0xff] }
  0x58   : > { %1005 = vst [vmem:[%s1728_s20 + $0xd0] sm:$0xff] %v749_v20  ;;  %v511_v3 = vld [vmem:[%s1713_s26 + $0x160] sm:$0xff]  ;;  %v765_v4 = vmax.f32 %v253_v60, %v509_v61  ;;  %v256_v5 = vld [vmem:[%s1706_s14 + $0x168] sm:$0xff]  ;;  %v766_v7 = vmax.f32 %v254_v63, %v510_v0  ;;  %v257_v8 = vld [vmem:[%s1706_s14 + $0x170] sm:$0xff] }
  0x59   : > { %1006 = vst [vmem:[%s1728_s20 + $0xd8] sm:$0xff] %v750_v23  ;;  %v512_v6 = vld [vmem:[%s1713_s26 + $0x168] sm:$0xff]  ;;  %v513_v9 = vld [vmem:[%s1713_s26 + $0x170] sm:$0xff]  ;;  %v767_v10 = vmax.f32 %v255_v2, %v511_v3  ;;  %v258_v11 = vld [vmem:[%s1706_s14 + $0x178] sm:$0xff] }
  0x5a   : > { %1007 = vst [vmem:[%s1728_s20 + $0xe0] sm:$0xff] %v751_v26  ;;  %v514_v12 = vld [vmem:[%s1713_s26 + $0x178] sm:$0xff]  ;;  %v768_v13 = vmax.f32 %v256_v5, %v512_v6  ;;  %v259_v14 = vld [vmem:[%s1706_s14 + $0x180] sm:$0xff]  ;;  %v769_v16 = vmax.f32 %v257_v8, %v513_v9  ;;  %v260_v17 = vld [vmem:[%s1706_s14 + $0x188] sm:$0xff] }
  0x5b   : > { %1008 = vst [vmem:[%s1728_s20 + $0xe8] sm:$0xff] %v752_v29  ;;  %v515_v15 = vld [vmem:[%s1713_s26 + $0x180] sm:$0xff]  ;;  %v516_v18 = vld [vmem:[%s1713_s26 + $0x188] sm:$0xff]  ;;  %v770_v19 = vmax.f32 %v258_v11, %v514_v12  ;;  %v261_v20 = vld [vmem:[%s1706_s14 + $0x190] sm:$0xff] }
  0x5c   : > { %1009 = vst [vmem:[%s1728_s20 + $0xf0] sm:$0xff] %v753_v32  ;;  %v517_v21 = vld [vmem:[%s1713_s26 + $0x190] sm:$0xff]  ;;  %v771_v22 = vmax.f32 %v259_v14, %v515_v15  ;;  %v262_v23 = vld [vmem:[%s1706_s14 + $0x198] sm:$0xff]  ;;  %v772_v25 = vmax.f32 %v260_v17, %v516_v18  ;;  %v263_v26 = vld [vmem:[%s1706_s14 + $0x1a0] sm:$0xff] }
  0x5d   : > { %1010 = vst [vmem:[%s1728_s20 + $0xf8] sm:$0xff] %v754_v35  ;;  %v518_v24 = vld [vmem:[%s1713_s26 + $0x198] sm:$0xff]  ;;  %v519_v27 = vld [vmem:[%s1713_s26 + $0x1a0] sm:$0xff]  ;;  %v773_v28 = vmax.f32 %v261_v20, %v517_v21  ;;  %v264_v29 = vld [vmem:[%s1706_s14 + $0x1a8] sm:$0xff] }
  0x5e   : > { %1011 = vst [vmem:[%s1728_s20 + $0x100] sm:$0xff] %v755_v38  ;;  %v520_v30 = vld [vmem:[%s1713_s26 + $0x1a8] sm:$0xff]  ;;  %v774_v31 = vmax.f32 %v262_v23, %v518_v24  ;;  %v265_v32 = vld [vmem:[%s1706_s14 + $0x1b0] sm:$0xff]  ;;  %v775_v34 = vmax.f32 %v263_v26, %v519_v27  ;;  %v266_v35 = vld [vmem:[%s1706_s14 + $0x1b8] sm:$0xff] }
  0x5f   : > { %1012 = vst [vmem:[%s1728_s20 + $0x108] sm:$0xff] %v756_v41  ;;  %v521_v33 = vld [vmem:[%s1713_s26 + $0x1b0] sm:$0xff]  ;;  %v522_v36 = vld [vmem:[%s1713_s26 + $0x1b8] sm:$0xff]  ;;  %v776_v37 = vmax.f32 %v264_v29, %v520_v30  ;;  %v267_v38 = vld [vmem:[%s1706_s14 + $0x1c0] sm:$0xff] }
  0x60   : > { %1013 = vst [vmem:[%s1728_s20 + $0x110] sm:$0xff] %v757_v44  ;;  %v523_v39 = vld [vmem:[%s1713_s26 + $0x1c0] sm:$0xff]  ;;  %v777_v40 = vmax.f32 %v265_v32, %v521_v33  ;;  %v268_v41 = vld [vmem:[%s1706_s14 + $0x1c8] sm:$0xff]  ;;  %v778_v43 = vmax.f32 %v266_v35, %v522_v36  ;;  %v269_v44 = vld [vmem:[%s1706_s14 + $0x1d0] sm:$0xff] }
  0x61   : > { %1014 = vst [vmem:[%s1728_s20 + $0x118] sm:$0xff] %v758_v47  ;;  %v524_v42 = vld [vmem:[%s1713_s26 + $0x1c8] sm:$0xff]  ;;  %v525_v45 = vld [vmem:[%s1713_s26 + $0x1d0] sm:$0xff]  ;;  %v779_v46 = vmax.f32 %v267_v38, %v523_v39  ;;  %v270_v47 = vld [vmem:[%s1706_s14 + $0x1d8] sm:$0xff] }
  0x62   : > { %1015 = vst [vmem:[%s1728_s20 + $0x120] sm:$0xff] %v759_v50  ;;  %v526_v48 = vld [vmem:[%s1713_s26 + $0x1d8] sm:$0xff]  ;;  %v780_v49 = vmax.f32 %v268_v41, %v524_v42  ;;  %v271_v50 = vld [vmem:[%s1706_s14 + $0x1e0] sm:$0xff]  ;;  %v781_v52 = vmax.f32 %v269_v44, %v525_v45  ;;  %v528_v54 = vld [vmem:[%s1713_s26 + $0x1e8] sm:$0xff] }
  0x63   : > { %1016 = vst [vmem:[%s1728_s20 + $0x128] sm:$0xff] %v760_v53  ;;  %v527_v51 = vld [vmem:[%s1713_s26 + $0x1e0] sm:$0xff]  ;;  %v272_v53 = vld [vmem:[%s1706_s14 + $0x1e8] sm:$0xff]  ;;  %v782_v55 = vmax.f32 %v270_v47, %v526_v48  ;;  %v529_v57 = vld [vmem:[%s1713_s26 + $0x1f0] sm:$0xff] }
  0x64   : > { %1017 = vst [vmem:[%s1728_s20 + $0x130] sm:$0xff] %v761_v56  ;;  %v273_v56 = vld [vmem:[%s1706_s14 + $0x1f0] sm:$0xff]  ;;  %v783_v58 = vmax.f32 %v271_v50, %v527_v51  ;;  %v530_v60 = vld [vmem:[%s1713_s26 + $0x1f8] sm:$0xff]  ;;  %v784_v61 = vmax.f32 %v272_v53, %v528_v54  ;;  %v531_v63 = vld [vmem:[%s1713_s26 + $0x200] sm:$0xff] }
  0x65   : > { %1018 = vst [vmem:[%s1728_s20 + $0x138] sm:$0xff] %v762_v59  ;;  %v274_v59 = vld [vmem:[%s1706_s14 + $0x1f8] sm:$0xff]  ;;  %v785_v0 = vmax.f32 %v273_v56, %v529_v57  ;;  %v532_v2 = vld [vmem:[%s1713_s26 + $0x208] sm:$0xff]  ;;  %v533_v5 = vld [vmem:[%s1713_s26 + $0x210] sm:$0xff] }
  0x66   : > { %1019 = vst [vmem:[%s1728_s20 + $0x140] sm:$0xff] %v763_v62  ;;  %v275_v62 = vld [vmem:[%s1706_s14 + $0x200] sm:$0xff]  ;;  %v786_v3 = vmax.f32 %v274_v59, %v530_v60  ;;  %v534_v8 = vld [vmem:[%s1713_s26 + $0x218] sm:$0xff]  ;;  %v536_v14 = vld [vmem:[%s1713_s26 + $0x228] sm:$0xff] }
  0x67   : > { %1020 = vst [vmem:[%s1728_s20 + $0x148] sm:$0xff] %v764_v1  ;;  %v276_v1 = vld [vmem:[%s1706_s14 + $0x208] sm:$0xff]  ;;  %v787_v6 = vmax.f32 %v275_v62, %v531_v63  ;;  %v535_v11 = vld [vmem:[%s1713_s26 + $0x220] sm:$0xff]  ;;  %v537_v17 = vld [vmem:[%s1713_s26 + $0x230] sm:$0xff] }
  0x68   : > { %1021 = vst [vmem:[%s1728_s20 + $0x150] sm:$0xff] %v765_v4  ;;  %v277_v4 = vld [vmem:[%s1706_s14 + $0x210] sm:$0xff]  ;;  %v788_v9 = vmax.f32 %v276_v1, %v532_v2  ;;  %v538_v20 = vld [vmem:[%s1713_s26 + $0x238] sm:$0xff]  ;;  %v539_v23 = vld [vmem:[%s1713_s26 + $0x240] sm:$0xff] }
  0x69   : > { %1022 = vst [vmem:[%s1728_s20 + $0x158] sm:$0xff] %v766_v7  ;;  %v278_v7 = vld [vmem:[%s1706_s14 + $0x218] sm:$0xff]  ;;  %v789_v12 = vmax.f32 %v277_v4, %v533_v5  ;;  %v540_v26 = vld [vmem:[%s1713_s26 + $0x248] sm:$0xff]  ;;  %v541_v29 = vld [vmem:[%s1713_s26 + $0x250] sm:$0xff] }
  0x6a   : > { %1023 = vst [vmem:[%s1728_s20 + $0x160] sm:$0xff] %v767_v10  ;;  %v279_v10 = vld [vmem:[%s1706_s14 + $0x220] sm:$0xff]  ;;  %v790_v15 = vmax.f32 %v278_v7, %v534_v8  ;;  %v542_v32 = vld [vmem:[%s1713_s26 + $0x258] sm:$0xff]  ;;  %v544_v38 = vld [vmem:[%s1713_s26 + $0x268] sm:$0xff] }
  0x6b   : > { %1024 = vst [vmem:[%s1728_s20 + $0x168] sm:$0xff] %v768_v13  ;;  %v280_v13 = vld [vmem:[%s1706_s14 + $0x228] sm:$0xff]  ;;  %v791_v18 = vmax.f32 %v279_v10, %v535_v11  ;;  %v543_v35 = vld [vmem:[%s1713_s26 + $0x260] sm:$0xff]  ;;  %v545_v41 = vld [vmem:[%s1713_s26 + $0x270] sm:$0xff] }
  0x6c   : > { %1025 = vst [vmem:[%s1728_s20 + $0x170] sm:$0xff] %v769_v16  ;;  %v281_v16 = vld [vmem:[%s1706_s14 + $0x230] sm:$0xff]  ;;  %v792_v21 = vmax.f32 %v280_v13, %v536_v14  ;;  %v546_v44 = vld [vmem:[%s1713_s26 + $0x278] sm:$0xff]  ;;  %v547_v47 = vld [vmem:[%s1713_s26 + $0x280] sm:$0xff] }
  0x6d   : > { %1026 = vst [vmem:[%s1728_s20 + $0x178] sm:$0xff] %v770_v19  ;;  %v282_v19 = vld [vmem:[%s1706_s14 + $0x238] sm:$0xff]  ;;  %v793_v24 = vmax.f32 %v281_v16, %v537_v17  ;;  %v548_v50 = vld [vmem:[%s1713_s26 + $0x288] sm:$0xff]  ;;  %v549_v53 = vld [vmem:[%s1713_s26 + $0x290] sm:$0xff] }
  0x6e   : > { %1027 = vst [vmem:[%s1728_s20 + $0x180] sm:$0xff] %v771_v22  ;;  %v283_v22 = vld [vmem:[%s1706_s14 + $0x240] sm:$0xff]  ;;  %v794_v27 = vmax.f32 %v282_v19, %v538_v20  ;;  %v550_v56 = vld [vmem:[%s1713_s26 + $0x298] sm:$0xff]  ;;  %v552_v62 = vld [vmem:[%s1713_s26 + $0x2a8] sm:$0xff] }
  0x6f   : > { %1028 = vst [vmem:[%s1728_s20 + $0x188] sm:$0xff] %v772_v25  ;;  %v284_v25 = vld [vmem:[%s1706_s14 + $0x248] sm:$0xff]  ;;  %v795_v30 = vmax.f32 %v283_v22, %v539_v23  ;;  %v551_v59 = vld [vmem:[%s1713_s26 + $0x2a0] sm:$0xff]  ;;  %v553_v1 = vld [vmem:[%s1713_s26 + $0x2b0] sm:$0xff] }
  0x70   : > { %1029 = vst [vmem:[%s1728_s20 + $0x190] sm:$0xff] %v773_v28  ;;  %v285_v28 = vld [vmem:[%s1706_s14 + $0x250] sm:$0xff]  ;;  %v796_v33 = vmax.f32 %v284_v25, %v540_v26  ;;  %v554_v4 = vld [vmem:[%s1713_s26 + $0x2b8] sm:$0xff]  ;;  %v555_v7 = vld [vmem:[%s1713_s26 + $0x2c0] sm:$0xff] }
  0x71   : > { %1030 = vst [vmem:[%s1728_s20 + $0x198] sm:$0xff] %v774_v31  ;;  %v286_v31 = vld [vmem:[%s1706_s14 + $0x258] sm:$0xff]  ;;  %v797_v36 = vmax.f32 %v285_v28, %v541_v29  ;;  %v556_v10 = vld [vmem:[%s1713_s26 + $0x2c8] sm:$0xff]  ;;  %v557_v13 = vld [vmem:[%s1713_s26 + $0x2d0] sm:$0xff] }
  0x72   : > { %1031 = vst [vmem:[%s1728_s20 + $0x1a0] sm:$0xff] %v775_v34  ;;  %v287_v34 = vld [vmem:[%s1706_s14 + $0x260] sm:$0xff]  ;;  %v798_v39 = vmax.f32 %v286_v31, %v542_v32  ;;  %v558_v16 = vld [vmem:[%s1713_s26 + $0x2d8] sm:$0xff]  ;;  %v560_v22 = vld [vmem:[%s1713_s26 + $0x2e8] sm:$0xff] }
  0x73   : > { %1032 = vst [vmem:[%s1728_s20 + $0x1a8] sm:$0xff] %v776_v37  ;;  %v288_v37 = vld [vmem:[%s1706_s14 + $0x268] sm:$0xff]  ;;  %v799_v42 = vmax.f32 %v287_v34, %v543_v35  ;;  %v559_v19 = vld [vmem:[%s1713_s26 + $0x2e0] sm:$0xff]  ;;  %v561_v25 = vld [vmem:[%s1713_s26 + $0x2f0] sm:$0xff] }
  0x74   : > { %1033 = vst [vmem:[%s1728_s20 + $0x1b0] sm:$0xff] %v777_v40  ;;  %v289_v40 = vld [vmem:[%s1706_s14 + $0x270] sm:$0xff]  ;;  %v800_v45 = vmax.f32 %v288_v37, %v544_v38  ;;  %v562_v28 = vld [vmem:[%s1713_s26 + $0x2f8] sm:$0xff]  ;;  %v563_v31 = vld [vmem:[%s1713_s26 + $0x300] sm:$0xff] }
  0x75   : > { %1034 = vst [vmem:[%s1728_s20 + $0x1b8] sm:$0xff] %v778_v43  ;;  %v290_v43 = vld [vmem:[%s1706_s14 + $0x278] sm:$0xff]  ;;  %v801_v48 = vmax.f32 %v289_v40, %v545_v41  ;;  %v564_v34 = vld [vmem:[%s1713_s26 + $0x308] sm:$0xff]  ;;  %v565_v37 = vld [vmem:[%s1713_s26 + $0x310] sm:$0xff] }
  0x76   : > { %1035 = vst [vmem:[%s1728_s20 + $0x1c0] sm:$0xff] %v779_v46  ;;  %v291_v46 = vld [vmem:[%s1706_s14 + $0x280] sm:$0xff]  ;;  %v802_v51 = vmax.f32 %v290_v43, %v546_v44  ;;  %v566_v40 = vld [vmem:[%s1713_s26 + $0x318] sm:$0xff] }
  0x77   : > { %1036 = vst [vmem:[%s1728_s20 + $0x1c8] sm:$0xff] %v780_v49  ;;  %v292_v49 = vld [vmem:[%s1706_s14 + $0x288] sm:$0xff]  ;;  %v803_v54 = vmax.f32 %v291_v46, %v547_v47  ;;  %v567_v43 = vld [vmem:[%s1713_s26 + $0x320] sm:$0xff] }
  0x78   : > { %1037 = vst [vmem:[%s1728_s20 + $0x1d0] sm:$0xff] %v781_v52  ;;  %v293_v52 = vld [vmem:[%s1706_s14 + $0x290] sm:$0xff]  ;;  %v804_v57 = vmax.f32 %v292_v49, %v548_v50  ;;  %v568_v46 = vld [vmem:[%s1713_s26 + $0x328] sm:$0xff] }
  0x79   : > { %1038 = vst [vmem:[%s1728_s20 + $0x1d8] sm:$0xff] %v782_v55  ;;  %v294_v55 = vld [vmem:[%s1706_s14 + $0x298] sm:$0xff]  ;;  %v805_v60 = vmax.f32 %v293_v52, %v549_v53  ;;  %v569_v49 = vld [vmem:[%s1713_s26 + $0x330] sm:$0xff] }
  0x7a   : > { %1039 = vst [vmem:[%s1728_s20 + $0x1e0] sm:$0xff] %v783_v58  ;;  %v295_v58 = vld [vmem:[%s1706_s14 + $0x2a0] sm:$0xff]  ;;  %v806_v63 = vmax.f32 %v294_v55, %v550_v56  ;;  %v570_v52 = vld [vmem:[%s1713_s26 + $0x338] sm:$0xff] }
  0x7b   : > { %1040 = vst [vmem:[%s1728_s20 + $0x1e8] sm:$0xff] %v784_v61  ;;  %v296_v61 = vld [vmem:[%s1706_s14 + $0x2a8] sm:$0xff]  ;;  %v807_v2 = vmax.f32 %v295_v58, %v551_v59  ;;  %v571_v55 = vld [vmem:[%s1713_s26 + $0x340] sm:$0xff] }
  0x7c   : > { %1041 = vst [vmem:[%s1728_s20 + $0x1f0] sm:$0xff] %v785_v0  ;;  %v297_v0 = vld [vmem:[%s1706_s14 + $0x2b0] sm:$0xff]  ;;  %v808_v5 = vmax.f32 %v296_v61, %v552_v62  ;;  %v572_v58 = vld [vmem:[%s1713_s26 + $0x348] sm:$0xff] }
  0x7d   : > { %1042 = vst [vmem:[%s1728_s20 + $0x1f8] sm:$0xff] %v786_v3  ;;  %v298_v3 = vld [vmem:[%s1706_s14 + $0x2b8] sm:$0xff]  ;;  %v809_v8 = vmax.f32 %v297_v0, %v553_v1  ;;  %v573_v61 = vld [vmem:[%s1713_s26 + $0x350] sm:$0xff] }
  0x7e   : > { %1043 = vst [vmem:[%s1728_s20 + $0x200] sm:$0xff] %v787_v6  ;;  %v299_v6 = vld [vmem:[%s1706_s14 + $0x2c0] sm:$0xff]  ;;  %v810_v11 = vmax.f32 %v298_v3, %v554_v4  ;;  %v574_v0 = vld [vmem:[%s1713_s26 + $0x358] sm:$0xff] }
  0x7f   : > { %1044 = vst [vmem:[%s1728_s20 + $0x208] sm:$0xff] %v788_v9  ;;  %v300_v9 = vld [vmem:[%s1706_s14 + $0x2c8] sm:$0xff]  ;;  %v811_v14 = vmax.f32 %v299_v6, %v555_v7  ;;  %v575_v3 = vld [vmem:[%s1713_s26 + $0x360] sm:$0xff] }
  0x80   : > { %1045 = vst [vmem:[%s1728_s20 + $0x210] sm:$0xff] %v789_v12  ;;  %v301_v12 = vld [vmem:[%s1706_s14 + $0x2d0] sm:$0xff]  ;;  %v812_v17 = vmax.f32 %v300_v9, %v556_v10  ;;  %v576_v6 = vld [vmem:[%s1713_s26 + $0x368] sm:$0xff] }
  0x81   : > { %1046 = vst [vmem:[%s1728_s20 + $0x218] sm:$0xff] %v790_v15  ;;  %v302_v15 = vld [vmem:[%s1706_s14 + $0x2d8] sm:$0xff]  ;;  %v813_v20 = vmax.f32 %v301_v12, %v557_v13  ;;  %v577_v9 = vld [vmem:[%s1713_s26 + $0x370] sm:$0xff] }
  0x82   : > { %1047 = vst [vmem:[%s1728_s20 + $0x220] sm:$0xff] %v791_v18  ;;  %v303_v18 = vld [vmem:[%s1706_s14 + $0x2e0] sm:$0xff]  ;;  %v814_v23 = vmax.f32 %v302_v15, %v558_v16  ;;  %v578_v12 = vld [vmem:[%s1713_s26 + $0x378] sm:$0xff] }
  0x83   : > { %1048 = vst [vmem:[%s1728_s20 + $0x228] sm:$0xff] %v792_v21  ;;  %v304_v21 = vld [vmem:[%s1706_s14 + $0x2e8] sm:$0xff]  ;;  %v815_v26 = vmax.f32 %v303_v18, %v559_v19  ;;  %v579_v15 = vld [vmem:[%s1713_s26 + $0x380] sm:$0xff] }
  0x84   : > { %1049 = vst [vmem:[%s1728_s20 + $0x230] sm:$0xff] %v793_v24  ;;  %v305_v24 = vld [vmem:[%s1706_s14 + $0x2f0] sm:$0xff]  ;;  %v816_v29 = vmax.f32 %v304_v21, %v560_v22  ;;  %v580_v18 = vld [vmem:[%s1713_s26 + $0x388] sm:$0xff] }
  0x85   : > { %1050 = vst [vmem:[%s1728_s20 + $0x238] sm:$0xff] %v794_v27  ;;  %v306_v27 = vld [vmem:[%s1706_s14 + $0x2f8] sm:$0xff]  ;;  %v817_v32 = vmax.f32 %v305_v24, %v561_v25  ;;  %v581_v21 = vld [vmem:[%s1713_s26 + $0x390] sm:$0xff] }
  0x86   : > { %1051 = vst [vmem:[%s1728_s20 + $0x240] sm:$0xff] %v795_v30  ;;  %v307_v30 = vld [vmem:[%s1706_s14 + $0x300] sm:$0xff]  ;;  %v818_v35 = vmax.f32 %v306_v27, %v562_v28  ;;  %v582_v24 = vld [vmem:[%s1713_s26 + $0x398] sm:$0xff] }
  0x87   : > { %1052 = vst [vmem:[%s1728_s20 + $0x248] sm:$0xff] %v796_v33  ;;  %v308_v33 = vld [vmem:[%s1706_s14 + $0x308] sm:$0xff]  ;;  %v819_v38 = vmax.f32 %v307_v30, %v563_v31  ;;  %v583_v27 = vld [vmem:[%s1713_s26 + $0x3a0] sm:$0xff] }
  0x88   : > { %1053 = vst [vmem:[%s1728_s20 + $0x250] sm:$0xff] %v797_v36  ;;  %v309_v36 = vld [vmem:[%s1706_s14 + $0x310] sm:$0xff]  ;;  %v820_v41 = vmax.f32 %v308_v33, %v564_v34  ;;  %v584_v30 = vld [vmem:[%s1713_s26 + $0x3a8] sm:$0xff] }
  0x89   : > { %1054 = vst [vmem:[%s1728_s20 + $0x258] sm:$0xff] %v798_v39  ;;  %v310_v39 = vld [vmem:[%s1706_s14 + $0x318] sm:$0xff]  ;;  %v821_v44 = vmax.f32 %v309_v36, %v565_v37  ;;  %v585_v33 = vld [vmem:[%s1713_s26 + $0x3b0] sm:$0xff] }
  0x8a   : > { %1055 = vst [vmem:[%s1728_s20 + $0x260] sm:$0xff] %v799_v42  ;;  %v311_v42 = vld [vmem:[%s1706_s14 + $0x320] sm:$0xff]  ;;  %v822_v47 = vmax.f32 %v310_v39, %v566_v40  ;;  %v586_v36 = vld [vmem:[%s1713_s26 + $0x3b8] sm:$0xff] }
  0x8b   : > { %1056 = vst [vmem:[%s1728_s20 + $0x268] sm:$0xff] %v800_v45  ;;  %v312_v45 = vld [vmem:[%s1706_s14 + $0x328] sm:$0xff]  ;;  %v823_v50 = vmax.f32 %v311_v42, %v567_v43  ;;  %v587_v39 = vld [vmem:[%s1713_s26 + $0x3c0] sm:$0xff] }
  0x8c   : > { %1057 = vst [vmem:[%s1728_s20 + $0x270] sm:$0xff] %v801_v48  ;;  %v313_v48 = vld [vmem:[%s1706_s14 + $0x330] sm:$0xff]  ;;  %v824_v53 = vmax.f32 %v312_v45, %v568_v46  ;;  %v588_v42 = vld [vmem:[%s1713_s26 + $0x3c8] sm:$0xff] }
  0x8d   : > { %1058 = vst [vmem:[%s1728_s20 + $0x278] sm:$0xff] %v802_v51  ;;  %v314_v51 = vld [vmem:[%s1706_s14 + $0x338] sm:$0xff]  ;;  %v825_v56 = vmax.f32 %v313_v48, %v569_v49  ;;  %v589_v45 = vld [vmem:[%s1713_s26 + $0x3d0] sm:$0xff] }
  0x8e   : > { %1059 = vst [vmem:[%s1728_s20 + $0x280] sm:$0xff] %v803_v54  ;;  %v315_v54 = vld [vmem:[%s1706_s14 + $0x340] sm:$0xff]  ;;  %v826_v59 = vmax.f32 %v314_v51, %v570_v52  ;;  %v590_v48 = vld [vmem:[%s1713_s26 + $0x3d8] sm:$0xff] }
  0x8f   : > { %1060 = vst [vmem:[%s1728_s20 + $0x288] sm:$0xff] %v804_v57  ;;  %v316_v57 = vld [vmem:[%s1706_s14 + $0x348] sm:$0xff]  ;;  %v827_v62 = vmax.f32 %v315_v54, %v571_v55  ;;  %v591_v51 = vld [vmem:[%s1713_s26 + $0x3e0] sm:$0xff] }
  0x90   : > { %1061 = vst [vmem:[%s1728_s20 + $0x290] sm:$0xff] %v805_v60  ;;  %v317_v60 = vld [vmem:[%s1706_s14 + $0x350] sm:$0xff]  ;;  %v828_v1 = vmax.f32 %v316_v57, %v572_v58  ;;  %v592_v54 = vld [vmem:[%s1713_s26 + $0x3e8] sm:$0xff] }
  0x91   : > { %1062 = vst [vmem:[%s1728_s20 + $0x298] sm:$0xff] %v806_v63  ;;  %v318_v63 = vld [vmem:[%s1706_s14 + $0x358] sm:$0xff]  ;;  %v829_v4 = vmax.f32 %v317_v60, %v573_v61  ;;  %v593_v57 = vld [vmem:[%s1713_s26 + $0x3f0] sm:$0xff] }
  0x92   : > { %1063 = vst [vmem:[%s1728_s20 + $0x2a0] sm:$0xff] %v807_v2  ;;  %v319_v2 = vld [vmem:[%s1706_s14 + $0x360] sm:$0xff]  ;;  %v830_v7 = vmax.f32 %v318_v63, %v574_v0  ;;  %v594_v60 = vld [vmem:[%s1713_s26 + $0x3f8] sm:$0xff] }
  0x93   : > { %1064 = vst [vmem:[%s1728_s20 + $0x2a8] sm:$0xff] %v808_v5  ;;  %v320_v5 = vld [vmem:[%s1706_s14 + $0x368] sm:$0xff]  ;;  %v831_v10 = vmax.f32 %v319_v2, %v575_v3  ;;  %v595_v63 = vld [vmem:[%s1713_s26 + $0x400] sm:$0xff] }
  0x94   : > { %1065 = vst [vmem:[%s1728_s20 + $0x2b0] sm:$0xff] %v809_v8  ;;  %v321_v8 = vld [vmem:[%s1706_s14 + $0x370] sm:$0xff]  ;;  %v832_v13 = vmax.f32 %v320_v5, %v576_v6  ;;  %v596_v2 = vld [vmem:[%s1713_s26 + $0x408] sm:$0xff] }
  0x95   : > { %1066 = vst [vmem:[%s1728_s20 + $0x2b8] sm:$0xff] %v810_v11  ;;  %v322_v11 = vld [vmem:[%s1706_s14 + $0x378] sm:$0xff]  ;;  %v833_v16 = vmax.f32 %v321_v8, %v577_v9  ;;  %v597_v5 = vld [vmem:[%s1713_s26 + $0x410] sm:$0xff] }
  0x96   : > { %1067 = vst [vmem:[%s1728_s20 + $0x2c0] sm:$0xff] %v811_v14  ;;  %v323_v14 = vld [vmem:[%s1706_s14 + $0x380] sm:$0xff]  ;;  %v834_v19 = vmax.f32 %v322_v11, %v578_v12  ;;  %v598_v8 = vld [vmem:[%s1713_s26 + $0x418] sm:$0xff] }
  0x97   : > { %1068 = vst [vmem:[%s1728_s20 + $0x2c8] sm:$0xff] %v812_v17  ;;  %v324_v17 = vld [vmem:[%s1706_s14 + $0x388] sm:$0xff]  ;;  %v835_v22 = vmax.f32 %v323_v14, %v579_v15  ;;  %v599_v11 = vld [vmem:[%s1713_s26 + $0x420] sm:$0xff] }
  0x98   : > { %1069 = vst [vmem:[%s1728_s20 + $0x2d0] sm:$0xff] %v813_v20  ;;  %v325_v20 = vld [vmem:[%s1706_s14 + $0x390] sm:$0xff]  ;;  %v836_v25 = vmax.f32 %v324_v17, %v580_v18  ;;  %v600_v14 = vld [vmem:[%s1713_s26 + $0x428] sm:$0xff] }
  0x99   : > { %1070 = vst [vmem:[%s1728_s20 + $0x2d8] sm:$0xff] %v814_v23  ;;  %v326_v23 = vld [vmem:[%s1706_s14 + $0x398] sm:$0xff]  ;;  %v837_v28 = vmax.f32 %v325_v20, %v581_v21  ;;  %v601_v17 = vld [vmem:[%s1713_s26 + $0x430] sm:$0xff] }
  0x9a   : > { %1071 = vst [vmem:[%s1728_s20 + $0x2e0] sm:$0xff] %v815_v26  ;;  %v327_v26 = vld [vmem:[%s1706_s14 + $0x3a0] sm:$0xff]  ;;  %v838_v31 = vmax.f32 %v326_v23, %v582_v24  ;;  %v602_v20 = vld [vmem:[%s1713_s26 + $0x438] sm:$0xff] }
  0x9b   : > { %1072 = vst [vmem:[%s1728_s20 + $0x2e8] sm:$0xff] %v816_v29  ;;  %v328_v29 = vld [vmem:[%s1706_s14 + $0x3a8] sm:$0xff]  ;;  %v839_v34 = vmax.f32 %v327_v26, %v583_v27  ;;  %v603_v23 = vld [vmem:[%s1713_s26 + $0x440] sm:$0xff] }
  0x9c   : > { %1073 = vst [vmem:[%s1728_s20 + $0x2f0] sm:$0xff] %v817_v32  ;;  %v329_v32 = vld [vmem:[%s1706_s14 + $0x3b0] sm:$0xff]  ;;  %v840_v37 = vmax.f32 %v328_v29, %v584_v30  ;;  %v604_v26 = vld [vmem:[%s1713_s26 + $0x448] sm:$0xff] }
  0x9d   : > { %1074 = vst [vmem:[%s1728_s20 + $0x2f8] sm:$0xff] %v818_v35  ;;  %v330_v35 = vld [vmem:[%s1706_s14 + $0x3b8] sm:$0xff]  ;;  %v841_v40 = vmax.f32 %v329_v32, %v585_v33  ;;  %v605_v29 = vld [vmem:[%s1713_s26 + $0x450] sm:$0xff] }
  0x9e   : > { %1075 = vst [vmem:[%s1728_s20 + $0x300] sm:$0xff] %v819_v38  ;;  %v331_v38 = vld [vmem:[%s1706_s14 + $0x3c0] sm:$0xff]  ;;  %v842_v43 = vmax.f32 %v330_v35, %v586_v36  ;;  %v606_v32 = vld [vmem:[%s1713_s26 + $0x458] sm:$0xff] }
  0x9f   : > { %1076 = vst [vmem:[%s1728_s20 + $0x308] sm:$0xff] %v820_v41  ;;  %v332_v41 = vld [vmem:[%s1706_s14 + $0x3c8] sm:$0xff]  ;;  %v843_v46 = vmax.f32 %v331_v38, %v587_v39  ;;  %v607_v35 = vld [vmem:[%s1713_s26 + $0x460] sm:$0xff] }
  0xa0   : > { %1077 = vst [vmem:[%s1728_s20 + $0x310] sm:$0xff] %v821_v44  ;;  %v333_v44 = vld [vmem:[%s1706_s14 + $0x3d0] sm:$0xff]  ;;  %v844_v49 = vmax.f32 %v332_v41, %v588_v42  ;;  %v608_v38 = vld [vmem:[%s1713_s26 + $0x468] sm:$0xff] }
  0xa1   : > { %1078 = vst [vmem:[%s1728_s20 + $0x318] sm:$0xff] %v822_v47  ;;  %v334_v47 = vld [vmem:[%s1706_s14 + $0x3d8] sm:$0xff]  ;;  %v845_v52 = vmax.f32 %v333_v44, %v589_v45  ;;  %v609_v41 = vld [vmem:[%s1713_s26 + $0x470] sm:$0xff] }
  0xa2   : > { %1079 = vst [vmem:[%s1728_s20 + $0x320] sm:$0xff] %v823_v50  ;;  %v335_v50 = vld [vmem:[%s1706_s14 + $0x3e0] sm:$0xff]  ;;  %v846_v55 = vmax.f32 %v334_v47, %v590_v48  ;;  %v610_v44 = vld [vmem:[%s1713_s26 + $0x478] sm:$0xff] }
  0xa3   : > { %1080 = vst [vmem:[%s1728_s20 + $0x328] sm:$0xff] %v824_v53  ;;  %v336_v53 = vld [vmem:[%s1706_s14 + $0x3e8] sm:$0xff]  ;;  %v847_v58 = vmax.f32 %v335_v50, %v591_v51  ;;  %v611_v47 = vld [vmem:[%s1713_s26 + $0x480] sm:$0xff] }
  0xa4   : > { %1081 = vst [vmem:[%s1728_s20 + $0x330] sm:$0xff] %v825_v56  ;;  %v337_v56 = vld [vmem:[%s1706_s14 + $0x3f0] sm:$0xff]  ;;  %v848_v61 = vmax.f32 %v336_v53, %v592_v54  ;;  %v612_v50 = vld [vmem:[%s1713_s26 + $0x488] sm:$0xff] }
  0xa5   : > { %1082 = vst [vmem:[%s1728_s20 + $0x338] sm:$0xff] %v826_v59  ;;  %v338_v59 = vld [vmem:[%s1706_s14 + $0x3f8] sm:$0xff]  ;;  %v849_v0 = vmax.f32 %v337_v56, %v593_v57  ;;  %v613_v53 = vld [vmem:[%s1713_s26 + $0x490] sm:$0xff] }
  0xa6   : > { %1083 = vst [vmem:[%s1728_s20 + $0x340] sm:$0xff] %v827_v62  ;;  %v339_v62 = vld [vmem:[%s1706_s14 + $0x400] sm:$0xff]  ;;  %v850_v3 = vmax.f32 %v338_v59, %v594_v60  ;;  %v614_v56 = vld [vmem:[%s1713_s26 + $0x498] sm:$0xff] }
  0xa7   : > { %1084 = vst [vmem:[%s1728_s20 + $0x348] sm:$0xff] %v828_v1  ;;  %v340_v1 = vld [vmem:[%s1706_s14 + $0x408] sm:$0xff]  ;;  %v851_v6 = vmax.f32 %v339_v62, %v595_v63  ;;  %v615_v59 = vld [vmem:[%s1713_s26 + $0x4a0] sm:$0xff] }
  0xa8   : > { %1085 = vst [vmem:[%s1728_s20 + $0x350] sm:$0xff] %v829_v4  ;;  %v341_v4 = vld [vmem:[%s1706_s14 + $0x410] sm:$0xff]  ;;  %v852_v9 = vmax.f32 %v340_v1, %v596_v2  ;;  %v616_v62 = vld [vmem:[%s1713_s26 + $0x4a8] sm:$0xff] }
  0xa9   : > { %1086 = vst [vmem:[%s1728_s20 + $0x358] sm:$0xff] %v830_v7  ;;  %v342_v7 = vld [vmem:[%s1706_s14 + $0x418] sm:$0xff]  ;;  %v853_v12 = vmax.f32 %v341_v4, %v597_v5  ;;  %v617_v1 = vld [vmem:[%s1713_s26 + $0x4b0] sm:$0xff] }
  0xaa   : > { %1087 = vst [vmem:[%s1728_s20 + $0x360] sm:$0xff] %v831_v10  ;;  %v343_v10 = vld [vmem:[%s1706_s14 + $0x420] sm:$0xff]  ;;  %v854_v15 = vmax.f32 %v342_v7, %v598_v8  ;;  %v618_v4 = vld [vmem:[%s1713_s26 + $0x4b8] sm:$0xff] }
  0xab   : > { %1088 = vst [vmem:[%s1728_s20 + $0x368] sm:$0xff] %v832_v13  ;;  %v344_v13 = vld [vmem:[%s1706_s14 + $0x428] sm:$0xff]  ;;  %v855_v18 = vmax.f32 %v343_v10, %v599_v11  ;;  %v619_v7 = vld [vmem:[%s1713_s26 + $0x4c0] sm:$0xff] }
  0xac   : > { %1089 = vst [vmem:[%s1728_s20 + $0x370] sm:$0xff] %v833_v16  ;;  %v345_v16 = vld [vmem:[%s1706_s14 + $0x430] sm:$0xff]  ;;  %v856_v21 = vmax.f32 %v344_v13, %v600_v14  ;;  %v620_v10 = vld [vmem:[%s1713_s26 + $0x4c8] sm:$0xff] }
  0xad   : > { %1090 = vst [vmem:[%s1728_s20 + $0x378] sm:$0xff] %v834_v19  ;;  %v346_v19 = vld [vmem:[%s1706_s14 + $0x438] sm:$0xff]  ;;  %v857_v24 = vmax.f32 %v345_v16, %v601_v17  ;;  %v621_v13 = vld [vmem:[%s1713_s26 + $0x4d0] sm:$0xff] }
  0xae   : > { %1091 = vst [vmem:[%s1728_s20 + $0x380] sm:$0xff] %v835_v22  ;;  %v347_v22 = vld [vmem:[%s1706_s14 + $0x440] sm:$0xff]  ;;  %v858_v27 = vmax.f32 %v346_v19, %v602_v20  ;;  %v622_v16 = vld [vmem:[%s1713_s26 + $0x4d8] sm:$0xff] }
  0xaf   : > { %1092 = vst [vmem:[%s1728_s20 + $0x388] sm:$0xff] %v836_v25  ;;  %v348_v25 = vld [vmem:[%s1706_s14 + $0x448] sm:$0xff]  ;;  %v859_v30 = vmax.f32 %v347_v22, %v603_v23  ;;  %v623_v19 = vld [vmem:[%s1713_s26 + $0x4e0] sm:$0xff] }
  0xb0   : > { %1093 = vst [vmem:[%s1728_s20 + $0x390] sm:$0xff] %v837_v28  ;;  %v349_v28 = vld [vmem:[%s1706_s14 + $0x450] sm:$0xff]  ;;  %v860_v33 = vmax.f32 %v348_v25, %v604_v26  ;;  %v624_v22 = vld [vmem:[%s1713_s26 + $0x4e8] sm:$0xff] }
  0xb1   : > { %1094 = vst [vmem:[%s1728_s20 + $0x398] sm:$0xff] %v838_v31  ;;  %v350_v31 = vld [vmem:[%s1706_s14 + $0x458] sm:$0xff]  ;;  %v861_v36 = vmax.f32 %v349_v28, %v605_v29  ;;  %v625_v25 = vld [vmem:[%s1713_s26 + $0x4f0] sm:$0xff] }
  0xb2   : > { %1095 = vst [vmem:[%s1728_s20 + $0x3a0] sm:$0xff] %v839_v34  ;;  %v351_v34 = vld [vmem:[%s1706_s14 + $0x460] sm:$0xff]  ;;  %v862_v39 = vmax.f32 %v350_v31, %v606_v32  ;;  %v626_v28 = vld [vmem:[%s1713_s26 + $0x4f8] sm:$0xff] }
  0xb3   : > { %1096 = vst [vmem:[%s1728_s20 + $0x3a8] sm:$0xff] %v840_v37  ;;  %v352_v37 = vld [vmem:[%s1706_s14 + $0x468] sm:$0xff]  ;;  %v863_v42 = vmax.f32 %v351_v34, %v607_v35  ;;  %v627_v31 = vld [vmem:[%s1713_s26 + $0x500] sm:$0xff] }
  0xb4   : > { %1097 = vst [vmem:[%s1728_s20 + $0x3b0] sm:$0xff] %v841_v40  ;;  %v353_v40 = vld [vmem:[%s1706_s14 + $0x470] sm:$0xff]  ;;  %v864_v45 = vmax.f32 %v352_v37, %v608_v38  ;;  %v628_v34 = vld [vmem:[%s1713_s26 + $0x508] sm:$0xff] }
  0xb5   : > { %1098 = vst [vmem:[%s1728_s20 + $0x3b8] sm:$0xff] %v842_v43  ;;  %v354_v43 = vld [vmem:[%s1706_s14 + $0x478] sm:$0xff]  ;;  %v865_v48 = vmax.f32 %v353_v40, %v609_v41  ;;  %v629_v37 = vld [vmem:[%s1713_s26 + $0x510] sm:$0xff] }
  0xb6   : > { %1099 = vst [vmem:[%s1728_s20 + $0x3c0] sm:$0xff] %v843_v46  ;;  %v355_v46 = vld [vmem:[%s1706_s14 + $0x480] sm:$0xff]  ;;  %v866_v51 = vmax.f32 %v354_v43, %v610_v44  ;;  %v630_v40 = vld [vmem:[%s1713_s26 + $0x518] sm:$0xff] }
  0xb7   : > { %1100 = vst [vmem:[%s1728_s20 + $0x3c8] sm:$0xff] %v844_v49  ;;  %v356_v49 = vld [vmem:[%s1706_s14 + $0x488] sm:$0xff]  ;;  %v867_v54 = vmax.f32 %v355_v46, %v611_v47  ;;  %v631_v43 = vld [vmem:[%s1713_s26 + $0x520] sm:$0xff] }
  0xb8   : > { %1101 = vst [vmem:[%s1728_s20 + $0x3d0] sm:$0xff] %v845_v52  ;;  %v357_v52 = vld [vmem:[%s1706_s14 + $0x490] sm:$0xff]  ;;  %v868_v57 = vmax.f32 %v356_v49, %v612_v50  ;;  %v632_v46 = vld [vmem:[%s1713_s26 + $0x528] sm:$0xff] }
  0xb9   : > { %1102 = vst [vmem:[%s1728_s20 + $0x3d8] sm:$0xff] %v846_v55  ;;  %v358_v55 = vld [vmem:[%s1706_s14 + $0x498] sm:$0xff]  ;;  %v869_v60 = vmax.f32 %v357_v52, %v613_v53  ;;  %v633_v49 = vld [vmem:[%s1713_s26 + $0x530] sm:$0xff] }
  0xba   : > { %1103 = vst [vmem:[%s1728_s20 + $0x3e0] sm:$0xff] %v847_v58  ;;  %v359_v58 = vld [vmem:[%s1706_s14 + $0x4a0] sm:$0xff]  ;;  %v870_v63 = vmax.f32 %v358_v55, %v614_v56  ;;  %v634_v52 = vld [vmem:[%s1713_s26 + $0x538] sm:$0xff] }
  0xbb   : > { %1104 = vst [vmem:[%s1728_s20 + $0x3e8] sm:$0xff] %v848_v61  ;;  %v360_v61 = vld [vmem:[%s1706_s14 + $0x4a8] sm:$0xff]  ;;  %v871_v2 = vmax.f32 %v359_v58, %v615_v59  ;;  %v635_v55 = vld [vmem:[%s1713_s26 + $0x540] sm:$0xff] }
  0xbc   : > { %1105 = vst [vmem:[%s1728_s20 + $0x3f0] sm:$0xff] %v849_v0  ;;  %v361_v0 = vld [vmem:[%s1706_s14 + $0x4b0] sm:$0xff]  ;;  %v872_v5 = vmax.f32 %v360_v61, %v616_v62  ;;  %v636_v58 = vld [vmem:[%s1713_s26 + $0x548] sm:$0xff] }
  0xbd   : > { %1106 = vst [vmem:[%s1728_s20 + $0x3f8] sm:$0xff] %v850_v3  ;;  %v362_v3 = vld [vmem:[%s1706_s14 + $0x4b8] sm:$0xff]  ;;  %v873_v8 = vmax.f32 %v361_v0, %v617_v1  ;;  %v637_v61 = vld [vmem:[%s1713_s26 + $0x550] sm:$0xff] }
  0xbe   : > { %1107 = vst [vmem:[%s1728_s20 + $0x400] sm:$0xff] %v851_v6  ;;  %v363_v6 = vld [vmem:[%s1706_s14 + $0x4c0] sm:$0xff]  ;;  %v874_v11 = vmax.f32 %v362_v3, %v618_v4  ;;  %v638_v0 = vld [vmem:[%s1713_s26 + $0x558] sm:$0xff] }
  0xbf   : > { %1108 = vst [vmem:[%s1728_s20 + $0x408] sm:$0xff] %v852_v9  ;;  %v364_v9 = vld [vmem:[%s1706_s14 + $0x4c8] sm:$0xff]  ;;  %v875_v14 = vmax.f32 %v363_v6, %v619_v7  ;;  %v639_v3 = vld [vmem:[%s1713_s26 + $0x560] sm:$0xff] }
  0xc0   : > { %1109 = vst [vmem:[%s1728_s20 + $0x410] sm:$0xff] %v853_v12  ;;  %v365_v12 = vld [vmem:[%s1706_s14 + $0x4d0] sm:$0xff]  ;;  %v876_v17 = vmax.f32 %v364_v9, %v620_v10  ;;  %v640_v6 = vld [vmem:[%s1713_s26 + $0x568] sm:$0xff] }
  0xc1   : > { %1110 = vst [vmem:[%s1728_s20 + $0x418] sm:$0xff] %v854_v15  ;;  %v366_v15 = vld [vmem:[%s1706_s14 + $0x4d8] sm:$0xff]  ;;  %v877_v20 = vmax.f32 %v365_v12, %v621_v13  ;;  %v641_v9 = vld [vmem:[%s1713_s26 + $0x570] sm:$0xff] }
  0xc2   : > { %1111 = vst [vmem:[%s1728_s20 + $0x420] sm:$0xff] %v855_v18  ;;  %v367_v18 = vld [vmem:[%s1706_s14 + $0x4e0] sm:$0xff]  ;;  %v878_v23 = vmax.f32 %v366_v15, %v622_v16  ;;  %v642_v12 = vld [vmem:[%s1713_s26 + $0x578] sm:$0xff] }
  0xc3   : > { %1112 = vst [vmem:[%s1728_s20 + $0x428] sm:$0xff] %v856_v21  ;;  %v368_v21 = vld [vmem:[%s1706_s14 + $0x4e8] sm:$0xff]  ;;  %v879_v26 = vmax.f32 %v367_v18, %v623_v19  ;;  %v643_v15 = vld [vmem:[%s1713_s26 + $0x580] sm:$0xff] }
  0xc4   : > { %1113 = vst [vmem:[%s1728_s20 + $0x430] sm:$0xff] %v857_v24  ;;  %v369_v24 = vld [vmem:[%s1706_s14 + $0x4f0] sm:$0xff]  ;;  %v880_v29 = vmax.f32 %v368_v21, %v624_v22  ;;  %v644_v18 = vld [vmem:[%s1713_s26 + $0x588] sm:$0xff] }
  0xc5   : > { %1114 = vst [vmem:[%s1728_s20 + $0x438] sm:$0xff] %v858_v27  ;;  %v370_v27 = vld [vmem:[%s1706_s14 + $0x4f8] sm:$0xff]  ;;  %v881_v32 = vmax.f32 %v369_v24, %v625_v25  ;;  %v645_v21 = vld [vmem:[%s1713_s26 + $0x590] sm:$0xff] }
  0xc6   : > { %1115 = vst [vmem:[%s1728_s20 + $0x440] sm:$0xff] %v859_v30  ;;  %v371_v30 = vld [vmem:[%s1706_s14 + $0x500] sm:$0xff]  ;;  %v882_v35 = vmax.f32 %v370_v27, %v626_v28  ;;  %v646_v24 = vld [vmem:[%s1713_s26 + $0x598] sm:$0xff] }
  0xc7   : > { %1116 = vst [vmem:[%s1728_s20 + $0x448] sm:$0xff] %v860_v33  ;;  %v372_v33 = vld [vmem:[%s1706_s14 + $0x508] sm:$0xff]  ;;  %v883_v38 = vmax.f32 %v371_v30, %v627_v31  ;;  %v647_v27 = vld [vmem:[%s1713_s26 + $0x5a0] sm:$0xff] }
  0xc8   : > { %1117 = vst [vmem:[%s1728_s20 + $0x450] sm:$0xff] %v861_v36  ;;  %v373_v36 = vld [vmem:[%s1706_s14 + $0x510] sm:$0xff]  ;;  %v884_v41 = vmax.f32 %v372_v33, %v628_v34  ;;  %v648_v30 = vld [vmem:[%s1713_s26 + $0x5a8] sm:$0xff] }
  0xc9   : > { %1118 = vst [vmem:[%s1728_s20 + $0x458] sm:$0xff] %v862_v39  ;;  %v374_v39 = vld [vmem:[%s1706_s14 + $0x518] sm:$0xff]  ;;  %v885_v44 = vmax.f32 %v373_v36, %v629_v37  ;;  %v649_v33 = vld [vmem:[%s1713_s26 + $0x5b0] sm:$0xff] }
  0xca   : > { %1119 = vst [vmem:[%s1728_s20 + $0x460] sm:$0xff] %v863_v42  ;;  %v375_v42 = vld [vmem:[%s1706_s14 + $0x520] sm:$0xff]  ;;  %v886_v47 = vmax.f32 %v374_v39, %v630_v40  ;;  %v650_v36 = vld [vmem:[%s1713_s26 + $0x5b8] sm:$0xff] }
  0xcb   : > { %1120 = vst [vmem:[%s1728_s20 + $0x468] sm:$0xff] %v864_v45  ;;  %v376_v45 = vld [vmem:[%s1706_s14 + $0x528] sm:$0xff]  ;;  %v887_v50 = vmax.f32 %v375_v42, %v631_v43  ;;  %v651_v39 = vld [vmem:[%s1713_s26 + $0x5c0] sm:$0xff] }
  0xcc   : > { %1121 = vst [vmem:[%s1728_s20 + $0x470] sm:$0xff] %v865_v48  ;;  %v377_v48 = vld [vmem:[%s1706_s14 + $0x530] sm:$0xff]  ;;  %v888_v53 = vmax.f32 %v376_v45, %v632_v46  ;;  %v652_v42 = vld [vmem:[%s1713_s26 + $0x5c8] sm:$0xff] }
  0xcd   : > { %1122 = vst [vmem:[%s1728_s20 + $0x478] sm:$0xff] %v866_v51  ;;  %v378_v51 = vld [vmem:[%s1706_s14 + $0x538] sm:$0xff]  ;;  %v889_v56 = vmax.f32 %v377_v48, %v633_v49  ;;  %v653_v45 = vld [vmem:[%s1713_s26 + $0x5d0] sm:$0xff] }
  0xce   : > { %1123 = vst [vmem:[%s1728_s20 + $0x480] sm:$0xff] %v867_v54  ;;  %v379_v54 = vld [vmem:[%s1706_s14 + $0x540] sm:$0xff]  ;;  %v890_v59 = vmax.f32 %v378_v51, %v634_v52  ;;  %v654_v48 = vld [vmem:[%s1713_s26 + $0x5d8] sm:$0xff] }
  0xcf   : > { %1124 = vst [vmem:[%s1728_s20 + $0x488] sm:$0xff] %v868_v57  ;;  %v380_v57 = vld [vmem:[%s1706_s14 + $0x548] sm:$0xff]  ;;  %v891_v62 = vmax.f32 %v379_v54, %v635_v55  ;;  %v655_v51 = vld [vmem:[%s1713_s26 + $0x5e0] sm:$0xff] }
  0xd0   : > { %1125 = vst [vmem:[%s1728_s20 + $0x490] sm:$0xff] %v869_v60  ;;  %v381_v60 = vld [vmem:[%s1706_s14 + $0x550] sm:$0xff]  ;;  %v892_v1 = vmax.f32 %v380_v57, %v636_v58  ;;  %v656_v54 = vld [vmem:[%s1713_s26 + $0x5e8] sm:$0xff] }
  0xd1   : > { %1126 = vst [vmem:[%s1728_s20 + $0x498] sm:$0xff] %v870_v63  ;;  %v382_v63 = vld [vmem:[%s1706_s14 + $0x558] sm:$0xff]  ;;  %v893_v4 = vmax.f32 %v381_v60, %v637_v61  ;;  %v657_v57 = vld [vmem:[%s1713_s26 + $0x5f0] sm:$0xff] }
  0xd2   : > { %1127 = vst [vmem:[%s1728_s20 + $0x4a0] sm:$0xff] %v871_v2  ;;  %v383_v2 = vld [vmem:[%s1706_s14 + $0x560] sm:$0xff]  ;;  %v894_v7 = vmax.f32 %v382_v63, %v638_v0  ;;  %v658_v60 = vld [vmem:[%s1713_s26 + $0x5f8] sm:$0xff] }
  0xd3   : > { %1128 = vst [vmem:[%s1728_s20 + $0x4a8] sm:$0xff] %v872_v5  ;;  %v384_v5 = vld [vmem:[%s1706_s14 + $0x568] sm:$0xff]  ;;  %v895_v10 = vmax.f32 %v383_v2, %v639_v3  ;;  %v659_v63 = vld [vmem:[%s1713_s26 + $0x600] sm:$0xff] }
  0xd4   : > { %1129 = vst [vmem:[%s1728_s20 + $0x4b0] sm:$0xff] %v873_v8  ;;  %v385_v8 = vld [vmem:[%s1706_s14 + $0x570] sm:$0xff]  ;;  %v896_v13 = vmax.f32 %v384_v5, %v640_v6  ;;  %v660_v2 = vld [vmem:[%s1713_s26 + $0x608] sm:$0xff] }
  0xd5   : > { %1130 = vst [vmem:[%s1728_s20 + $0x4b8] sm:$0xff] %v874_v11  ;;  %v386_v11 = vld [vmem:[%s1706_s14 + $0x578] sm:$0xff]  ;;  %v897_v16 = vmax.f32 %v385_v8, %v641_v9  ;;  %v661_v5 = vld [vmem:[%s1713_s26 + $0x610] sm:$0xff] }
  0xd6   : > { %1131 = vst [vmem:[%s1728_s20 + $0x4c0] sm:$0xff] %v875_v14  ;;  %v387_v14 = vld [vmem:[%s1706_s14 + $0x580] sm:$0xff]  ;;  %v898_v19 = vmax.f32 %v386_v11, %v642_v12  ;;  %v662_v8 = vld [vmem:[%s1713_s26 + $0x618] sm:$0xff] }
  0xd7   : > { %1132 = vst [vmem:[%s1728_s20 + $0x4c8] sm:$0xff] %v876_v17  ;;  %v388_v17 = vld [vmem:[%s1706_s14 + $0x588] sm:$0xff]  ;;  %v899_v22 = vmax.f32 %v387_v14, %v643_v15  ;;  %v663_v11 = vld [vmem:[%s1713_s26 + $0x620] sm:$0xff] }
  0xd8   : > { %1133 = vst [vmem:[%s1728_s20 + $0x4d0] sm:$0xff] %v877_v20  ;;  %v389_v20 = vld [vmem:[%s1706_s14 + $0x590] sm:$0xff]  ;;  %v900_v25 = vmax.f32 %v388_v17, %v644_v18  ;;  %v664_v14 = vld [vmem:[%s1713_s26 + $0x628] sm:$0xff] }
  0xd9   : > { %1134 = vst [vmem:[%s1728_s20 + $0x4d8] sm:$0xff] %v878_v23  ;;  %v390_v23 = vld [vmem:[%s1706_s14 + $0x598] sm:$0xff]  ;;  %v901_v28 = vmax.f32 %v389_v20, %v645_v21  ;;  %v665_v17 = vld [vmem:[%s1713_s26 + $0x630] sm:$0xff] }
  0xda   : > { %1135 = vst [vmem:[%s1728_s20 + $0x4e0] sm:$0xff] %v879_v26  ;;  %v391_v26 = vld [vmem:[%s1706_s14 + $0x5a0] sm:$0xff]  ;;  %v902_v31 = vmax.f32 %v390_v23, %v646_v24  ;;  %v666_v20 = vld [vmem:[%s1713_s26 + $0x638] sm:$0xff] }
  0xdb   : > { %1136 = vst [vmem:[%s1728_s20 + $0x4e8] sm:$0xff] %v880_v29  ;;  %v392_v29 = vld [vmem:[%s1706_s14 + $0x5a8] sm:$0xff]  ;;  %v903_v34 = vmax.f32 %v391_v26, %v647_v27  ;;  %v667_v23 = vld [vmem:[%s1713_s26 + $0x640] sm:$0xff] }
  0xdc   : > { %1137 = vst [vmem:[%s1728_s20 + $0x4f0] sm:$0xff] %v881_v32  ;;  %v393_v32 = vld [vmem:[%s1706_s14 + $0x5b0] sm:$0xff]  ;;  %v904_v37 = vmax.f32 %v392_v29, %v648_v30  ;;  %v668_v26 = vld [vmem:[%s1713_s26 + $0x648] sm:$0xff] }
  0xdd   : > { %1138 = vst [vmem:[%s1728_s20 + $0x4f8] sm:$0xff] %v882_v35  ;;  %v394_v35 = vld [vmem:[%s1706_s14 + $0x5b8] sm:$0xff]  ;;  %v905_v40 = vmax.f32 %v393_v32, %v649_v33  ;;  %v669_v29 = vld [vmem:[%s1713_s26 + $0x650] sm:$0xff] }
  0xde   : > { %1139 = vst [vmem:[%s1728_s20 + $0x500] sm:$0xff] %v883_v38  ;;  %v395_v38 = vld [vmem:[%s1706_s14 + $0x5c0] sm:$0xff]  ;;  %v906_v43 = vmax.f32 %v394_v35, %v650_v36  ;;  %v670_v32 = vld [vmem:[%s1713_s26 + $0x658] sm:$0xff] }
  0xdf   : > { %1140 = vst [vmem:[%s1728_s20 + $0x508] sm:$0xff] %v884_v41  ;;  %v396_v41 = vld [vmem:[%s1706_s14 + $0x5c8] sm:$0xff]  ;;  %v907_v46 = vmax.f32 %v395_v38, %v651_v39  ;;  %v671_v35 = vld [vmem:[%s1713_s26 + $0x660] sm:$0xff] }
  0xe0   : > { %1141 = vst [vmem:[%s1728_s20 + $0x510] sm:$0xff] %v885_v44  ;;  %v397_v44 = vld [vmem:[%s1706_s14 + $0x5d0] sm:$0xff]  ;;  %v908_v49 = vmax.f32 %v396_v41, %v652_v42  ;;  %v672_v38 = vld [vmem:[%s1713_s26 + $0x668] sm:$0xff] }
  0xe1   : > { %1142 = vst [vmem:[%s1728_s20 + $0x518] sm:$0xff] %v886_v47  ;;  %v398_v47 = vld [vmem:[%s1706_s14 + $0x5d8] sm:$0xff]  ;;  %v909_v52 = vmax.f32 %v397_v44, %v653_v45  ;;  %v673_v41 = vld [vmem:[%s1713_s26 + $0x670] sm:$0xff] }
  0xe2   : > { %1143 = vst [vmem:[%s1728_s20 + $0x520] sm:$0xff] %v887_v50  ;;  %v399_v50 = vld [vmem:[%s1706_s14 + $0x5e0] sm:$0xff]  ;;  %v910_v55 = vmax.f32 %v398_v47, %v654_v48  ;;  %v674_v44 = vld [vmem:[%s1713_s26 + $0x678] sm:$0xff] }
  0xe3   : > { %1144 = vst [vmem:[%s1728_s20 + $0x528] sm:$0xff] %v888_v53  ;;  %v400_v53 = vld [vmem:[%s1706_s14 + $0x5e8] sm:$0xff]  ;;  %v911_v58 = vmax.f32 %v399_v50, %v655_v51  ;;  %v675_v47 = vld [vmem:[%s1713_s26 + $0x680] sm:$0xff] }
  0xe4   : > { %1145 = vst [vmem:[%s1728_s20 + $0x530] sm:$0xff] %v889_v56  ;;  %v401_v56 = vld [vmem:[%s1706_s14 + $0x5f0] sm:$0xff]  ;;  %v912_v61 = vmax.f32 %v400_v53, %v656_v54  ;;  %v676_v50 = vld [vmem:[%s1713_s26 + $0x688] sm:$0xff] }
  0xe5   : > { %1146 = vst [vmem:[%s1728_s20 + $0x538] sm:$0xff] %v890_v59  ;;  %v402_v59 = vld [vmem:[%s1706_s14 + $0x5f8] sm:$0xff]  ;;  %v913_v0 = vmax.f32 %v401_v56, %v657_v57  ;;  %v677_v53 = vld [vmem:[%s1713_s26 + $0x690] sm:$0xff] }
  0xe6   : > { %1147 = vst [vmem:[%s1728_s20 + $0x540] sm:$0xff] %v891_v62  ;;  %v403_v62 = vld [vmem:[%s1706_s14 + $0x600] sm:$0xff]  ;;  %v914_v3 = vmax.f32 %v402_v59, %v658_v60  ;;  %v678_v56 = vld [vmem:[%s1713_s26 + $0x698] sm:$0xff] }
  0xe7   : > { %1148 = vst [vmem:[%s1728_s20 + $0x548] sm:$0xff] %v892_v1  ;;  %v404_v1 = vld [vmem:[%s1706_s14 + $0x608] sm:$0xff]  ;;  %v915_v6 = vmax.f32 %v403_v62, %v659_v63  ;;  %v679_v59 = vld [vmem:[%s1713_s26 + $0x6a0] sm:$0xff] }
  0xe8   : > { %1149 = vst [vmem:[%s1728_s20 + $0x550] sm:$0xff] %v893_v4  ;;  %v405_v4 = vld [vmem:[%s1706_s14 + $0x610] sm:$0xff]  ;;  %v916_v9 = vmax.f32 %v404_v1, %v660_v2  ;;  %v680_v62 = vld [vmem:[%s1713_s26 + $0x6a8] sm:$0xff] }
  0xe9   : > { %1150 = vst [vmem:[%s1728_s20 + $0x558] sm:$0xff] %v894_v7  ;;  %v406_v7 = vld [vmem:[%s1706_s14 + $0x618] sm:$0xff]  ;;  %v917_v12 = vmax.f32 %v405_v4, %v661_v5  ;;  %v681_v1 = vld [vmem:[%s1713_s26 + $0x6b0] sm:$0xff] }
  0xea   : > { %1151 = vst [vmem:[%s1728_s20 + $0x560] sm:$0xff] %v895_v10  ;;  %v407_v10 = vld [vmem:[%s1706_s14 + $0x620] sm:$0xff]  ;;  %v918_v15 = vmax.f32 %v406_v7, %v662_v8  ;;  %v682_v4 = vld [vmem:[%s1713_s26 + $0x6b8] sm:$0xff] }
  0xeb   : > { %1152 = vst [vmem:[%s1728_s20 + $0x568] sm:$0xff] %v896_v13  ;;  %v408_v13 = vld [vmem:[%s1706_s14 + $0x628] sm:$0xff]  ;;  %v919_v18 = vmax.f32 %v407_v10, %v663_v11  ;;  %v683_v7 = vld [vmem:[%s1713_s26 + $0x6c0] sm:$0xff] }
  0xec   : > { %1153 = vst [vmem:[%s1728_s20 + $0x570] sm:$0xff] %v897_v16  ;;  %v409_v16 = vld [vmem:[%s1706_s14 + $0x630] sm:$0xff]  ;;  %v920_v21 = vmax.f32 %v408_v13, %v664_v14  ;;  %v684_v10 = vld [vmem:[%s1713_s26 + $0x6c8] sm:$0xff] }
  0xed   : > { %1154 = vst [vmem:[%s1728_s20 + $0x578] sm:$0xff] %v898_v19  ;;  %v410_v19 = vld [vmem:[%s1706_s14 + $0x638] sm:$0xff]  ;;  %v921_v24 = vmax.f32 %v409_v16, %v665_v17  ;;  %v685_v13 = vld [vmem:[%s1713_s26 + $0x6d0] sm:$0xff] }
  0xee   : > { %1155 = vst [vmem:[%s1728_s20 + $0x580] sm:$0xff] %v899_v22  ;;  %v411_v22 = vld [vmem:[%s1706_s14 + $0x640] sm:$0xff]  ;;  %v922_v27 = vmax.f32 %v410_v19, %v666_v20  ;;  %v686_v16 = vld [vmem:[%s1713_s26 + $0x6d8] sm:$0xff] }
  0xef   : > { %1156 = vst [vmem:[%s1728_s20 + $0x588] sm:$0xff] %v900_v25  ;;  %v412_v25 = vld [vmem:[%s1706_s14 + $0x648] sm:$0xff]  ;;  %v923_v30 = vmax.f32 %v411_v22, %v667_v23  ;;  %v687_v19 = vld [vmem:[%s1713_s26 + $0x6e0] sm:$0xff] }
  0xf0   : > { %1157 = vst [vmem:[%s1728_s20 + $0x590] sm:$0xff] %v901_v28  ;;  %v413_v28 = vld [vmem:[%s1706_s14 + $0x650] sm:$0xff]  ;;  %v924_v33 = vmax.f32 %v412_v25, %v668_v26  ;;  %v688_v22 = vld [vmem:[%s1713_s26 + $0x6e8] sm:$0xff] }
  0xf1   : > { %1158 = vst [vmem:[%s1728_s20 + $0x598] sm:$0xff] %v902_v31  ;;  %v414_v31 = vld [vmem:[%s1706_s14 + $0x658] sm:$0xff]  ;;  %v925_v36 = vmax.f32 %v413_v28, %v669_v29  ;;  %v689_v25 = vld [vmem:[%s1713_s26 + $0x6f0] sm:$0xff] }
  0xf2   : > { %1159 = vst [vmem:[%s1728_s20 + $0x5a0] sm:$0xff] %v903_v34  ;;  %v415_v34 = vld [vmem:[%s1706_s14 + $0x660] sm:$0xff]  ;;  %v926_v39 = vmax.f32 %v414_v31, %v670_v32  ;;  %v690_v28 = vld [vmem:[%s1713_s26 + $0x6f8] sm:$0xff] }
  0xf3   : > { %1160 = vst [vmem:[%s1728_s20 + $0x5a8] sm:$0xff] %v904_v37  ;;  %v416_v37 = vld [vmem:[%s1706_s14 + $0x668] sm:$0xff]  ;;  %v927_v42 = vmax.f32 %v415_v34, %v671_v35  ;;  %v691_v31 = vld [vmem:[%s1713_s26 + $0x700] sm:$0xff] }
  0xf4   : > { %1161 = vst [vmem:[%s1728_s20 + $0x5b0] sm:$0xff] %v905_v40  ;;  %v417_v40 = vld [vmem:[%s1706_s14 + $0x670] sm:$0xff]  ;;  %v928_v45 = vmax.f32 %v416_v37, %v672_v38  ;;  %v692_v34 = vld [vmem:[%s1713_s26 + $0x708] sm:$0xff] }
  0xf5   : > { %1162 = vst [vmem:[%s1728_s20 + $0x5b8] sm:$0xff] %v906_v43  ;;  %v418_v43 = vld [vmem:[%s1706_s14 + $0x678] sm:$0xff]  ;;  %v929_v48 = vmax.f32 %v417_v40, %v673_v41  ;;  %v693_v37 = vld [vmem:[%s1713_s26 + $0x710] sm:$0xff] }
  0xf6   : > { %1163 = vst [vmem:[%s1728_s20 + $0x5c0] sm:$0xff] %v907_v46  ;;  %v419_v46 = vld [vmem:[%s1706_s14 + $0x680] sm:$0xff]  ;;  %v930_v51 = vmax.f32 %v418_v43, %v674_v44  ;;  %v694_v40 = vld [vmem:[%s1713_s26 + $0x718] sm:$0xff] }
  0xf7   : > { %1164 = vst [vmem:[%s1728_s20 + $0x5c8] sm:$0xff] %v908_v49  ;;  %v420_v49 = vld [vmem:[%s1706_s14 + $0x688] sm:$0xff]  ;;  %v931_v54 = vmax.f32 %v419_v46, %v675_v47  ;;  %v695_v43 = vld [vmem:[%s1713_s26 + $0x720] sm:$0xff] }
  0xf8   : > { %1165 = vst [vmem:[%s1728_s20 + $0x5d0] sm:$0xff] %v909_v52  ;;  %v421_v52 = vld [vmem:[%s1706_s14 + $0x690] sm:$0xff]  ;;  %v932_v57 = vmax.f32 %v420_v49, %v676_v50  ;;  %v696_v46 = vld [vmem:[%s1713_s26 + $0x728] sm:$0xff] }
  0xf9   : > { %1166 = vst [vmem:[%s1728_s20 + $0x5d8] sm:$0xff] %v910_v55  ;;  %v422_v55 = vld [vmem:[%s1706_s14 + $0x698] sm:$0xff]  ;;  %v933_v60 = vmax.f32 %v421_v52, %v677_v53  ;;  %v697_v49 = vld [vmem:[%s1713_s26 + $0x730] sm:$0xff] }
  0xfa   : > { %1167 = vst [vmem:[%s1728_s20 + $0x5e0] sm:$0xff] %v911_v58  ;;  %v423_v58 = vld [vmem:[%s1706_s14 + $0x6a0] sm:$0xff]  ;;  %v934_v63 = vmax.f32 %v422_v55, %v678_v56  ;;  %v698_v52 = vld [vmem:[%s1713_s26 + $0x738] sm:$0xff] }
  0xfb   : > { %1168 = vst [vmem:[%s1728_s20 + $0x5e8] sm:$0xff] %v912_v61  ;;  %v424_v61 = vld [vmem:[%s1706_s14 + $0x6a8] sm:$0xff]  ;;  %v935_v2 = vmax.f32 %v423_v58, %v679_v59  ;;  %v699_v55 = vld [vmem:[%s1713_s26 + $0x740] sm:$0xff] }
  0xfc   : > { %1169 = vst [vmem:[%s1728_s20 + $0x5f0] sm:$0xff] %v913_v0  ;;  %v425_v0 = vld [vmem:[%s1706_s14 + $0x6b0] sm:$0xff]  ;;  %v936_v5 = vmax.f32 %v424_v61, %v680_v62  ;;  %v700_v58 = vld [vmem:[%s1713_s26 + $0x748] sm:$0xff] }
  0xfd   : > { %1170 = vst [vmem:[%s1728_s20 + $0x5f8] sm:$0xff] %v914_v3  ;;  %v426_v3 = vld [vmem:[%s1706_s14 + $0x6b8] sm:$0xff]  ;;  %v937_v8 = vmax.f32 %v425_v0, %v681_v1  ;;  %v701_v61 = vld [vmem:[%s1713_s26 + $0x750] sm:$0xff] }
  0xfe   : > { %1171 = vst [vmem:[%s1728_s20 + $0x600] sm:$0xff] %v915_v6  ;;  %v427_v6 = vld [vmem:[%s1706_s14 + $0x6c0] sm:$0xff]  ;;  %v938_v11 = vmax.f32 %v426_v3, %v682_v4  ;;  %v702_v0 = vld [vmem:[%s1713_s26 + $0x758] sm:$0xff] }
  0xff   : > { %1172 = vst [vmem:[%s1728_s20 + $0x608] sm:$0xff] %v916_v9  ;;  %v428_v9 = vld [vmem:[%s1706_s14 + $0x6c8] sm:$0xff]  ;;  %v939_v14 = vmax.f32 %v427_v6, %v683_v7  ;;  %v703_v3 = vld [vmem:[%s1713_s26 + $0x760] sm:$0xff] }
 0x100   : > { %1173 = vst [vmem:[%s1728_s20 + $0x610] sm:$0xff] %v917_v12  ;;  %v429_v12 = vld [vmem:[%s1706_s14 + $0x6d0] sm:$0xff]  ;;  %v940_v17 = vmax.f32 %v428_v9, %v684_v10  ;;  %v704_v6 = vld [vmem:[%s1713_s26 + $0x768] sm:$0xff] }
 0x101   : > { %1174 = vst [vmem:[%s1728_s20 + $0x618] sm:$0xff] %v918_v15  ;;  %v430_v15 = vld [vmem:[%s1706_s14 + $0x6d8] sm:$0xff]  ;;  %v941_v20 = vmax.f32 %v429_v12, %v685_v13  ;;  %v705_v9 = vld [vmem:[%s1713_s26 + $0x770] sm:$0xff] }
 0x102   : > { %1175 = vst [vmem:[%s1728_s20 + $0x620] sm:$0xff] %v919_v18  ;;  %v431_v18 = vld [vmem:[%s1706_s14 + $0x6e0] sm:$0xff]  ;;  %v942_v23 = vmax.f32 %v430_v15, %v686_v16  ;;  %v706_v12 = vld [vmem:[%s1713_s26 + $0x778] sm:$0xff] }
 0x103   : > { %1176 = vst [vmem:[%s1728_s20 + $0x628] sm:$0xff] %v920_v21  ;;  %v432_v21 = vld [vmem:[%s1706_s14 + $0x6e8] sm:$0xff]  ;;  %v943_v26 = vmax.f32 %v431_v18, %v687_v19  ;;  %v707_v15 = vld [vmem:[%s1713_s26 + $0x780] sm:$0xff] }
 0x104   : > { %1177 = vst [vmem:[%s1728_s20 + $0x630] sm:$0xff] %v921_v24  ;;  %v433_v24 = vld [vmem:[%s1706_s14 + $0x6f0] sm:$0xff]  ;;  %v944_v29 = vmax.f32 %v432_v21, %v688_v22  ;;  %v708_v18 = vld [vmem:[%s1713_s26 + $0x788] sm:$0xff] }
 0x105   : > { %1178 = vst [vmem:[%s1728_s20 + $0x638] sm:$0xff] %v922_v27  ;;  %v434_v27 = vld [vmem:[%s1706_s14 + $0x6f8] sm:$0xff]  ;;  %v945_v32 = vmax.f32 %v433_v24, %v689_v25  ;;  %v709_v21 = vld [vmem:[%s1713_s26 + $0x790] sm:$0xff] }
 0x106   : > { %1179 = vst [vmem:[%s1728_s20 + $0x640] sm:$0xff] %v923_v30  ;;  %v435_v30 = vld [vmem:[%s1706_s14 + $0x700] sm:$0xff]  ;;  %v946_v35 = vmax.f32 %v434_v27, %v690_v28  ;;  %v710_v24 = vld [vmem:[%s1713_s26 + $0x798] sm:$0xff] }
 0x107   : > { %1180 = vst [vmem:[%s1728_s20 + $0x648] sm:$0xff] %v924_v33  ;;  %v436_v33 = vld [vmem:[%s1706_s14 + $0x708] sm:$0xff]  ;;  %v947_v38 = vmax.f32 %v435_v30, %v691_v31  ;;  %v711_v27 = vld [vmem:[%s1713_s26 + $0x7a0] sm:$0xff] }
 0x108   : > { %1181 = vst [vmem:[%s1728_s20 + $0x650] sm:$0xff] %v925_v36  ;;  %v437_v36 = vld [vmem:[%s1706_s14 + $0x710] sm:$0xff]  ;;  %v948_v41 = vmax.f32 %v436_v33, %v692_v34  ;;  %v712_v30 = vld [vmem:[%s1713_s26 + $0x7a8] sm:$0xff] }
 0x109   : > { %1182 = vst [vmem:[%s1728_s20 + $0x658] sm:$0xff] %v926_v39  ;;  %v438_v39 = vld [vmem:[%s1706_s14 + $0x718] sm:$0xff]  ;;  %v949_v44 = vmax.f32 %v437_v36, %v693_v37  ;;  %v713_v33 = vld [vmem:[%s1713_s26 + $0x7b0] sm:$0xff] }
 0x10a   : > { %1183 = vst [vmem:[%s1728_s20 + $0x660] sm:$0xff] %v927_v42  ;;  %v439_v42 = vld [vmem:[%s1706_s14 + $0x720] sm:$0xff]  ;;  %v950_v47 = vmax.f32 %v438_v39, %v694_v40  ;;  %v714_v36 = vld [vmem:[%s1713_s26 + $0x7b8] sm:$0xff] }
 0x10b   : > { %1184 = vst [vmem:[%s1728_s20 + $0x668] sm:$0xff] %v928_v45  ;;  %v440_v45 = vld [vmem:[%s1706_s14 + $0x728] sm:$0xff]  ;;  %v951_v50 = vmax.f32 %v439_v42, %v695_v43  ;;  %v715_v39 = vld [vmem:[%s1713_s26 + $0x7c0] sm:$0xff] }
 0x10c   : > { %1185 = vst [vmem:[%s1728_s20 + $0x670] sm:$0xff] %v929_v48  ;;  %v441_v48 = vld [vmem:[%s1706_s14 + $0x730] sm:$0xff]  ;;  %v952_v53 = vmax.f32 %v440_v45, %v696_v46  ;;  %v716_v42 = vld [vmem:[%s1713_s26 + $0x7c8] sm:$0xff] }
 0x10d   : > { %1186 = vst [vmem:[%s1728_s20 + $0x678] sm:$0xff] %v930_v51  ;;  %v442_v51 = vld [vmem:[%s1706_s14 + $0x738] sm:$0xff]  ;;  %v953_v56 = vmax.f32 %v441_v48, %v697_v49  ;;  %v717_v45 = vld [vmem:[%s1713_s26 + $0x7d0] sm:$0xff] }
 0x10e   : > { %1187 = vst [vmem:[%s1728_s20 + $0x680] sm:$0xff] %v931_v54  ;;  %v443_v54 = vld [vmem:[%s1706_s14 + $0x740] sm:$0xff]  ;;  %v954_v59 = vmax.f32 %v442_v51, %v698_v52  ;;  %v718_v48 = vld [vmem:[%s1713_s26 + $0x7d8] sm:$0xff] }
 0x10f   : > { %1188 = vst [vmem:[%s1728_s20 + $0x688] sm:$0xff] %v932_v57  ;;  %v444_v57 = vld [vmem:[%s1706_s14 + $0x748] sm:$0xff]  ;;  %v955_v62 = vmax.f32 %v443_v54, %v699_v55  ;;  %v719_v51 = vld [vmem:[%s1713_s26 + $0x7e0] sm:$0xff] }
 0x110   : > { %1189 = vst [vmem:[%s1728_s20 + $0x690] sm:$0xff] %v933_v60  ;;  %v445_v60 = vld [vmem:[%s1706_s14 + $0x750] sm:$0xff]  ;;  %v956_v1 = vmax.f32 %v444_v57, %v700_v58  ;;  %v720_v54 = vld [vmem:[%s1713_s26 + $0x7e8] sm:$0xff] }
 0x111   : > { %1190 = vst [vmem:[%s1728_s20 + $0x698] sm:$0xff] %v934_v63  ;;  %v446_v63 = vld [vmem:[%s1706_s14 + $0x758] sm:$0xff]  ;;  %v957_v4 = vmax.f32 %v445_v60, %v701_v61  ;;  %v721_v57 = vld [vmem:[%s1713_s26 + $0x7f0] sm:$0xff] }
 0x112   : > { %1191 = vst [vmem:[%s1728_s20 + $0x6a0] sm:$0xff] %v935_v2  ;;  %v447_v2 = vld [vmem:[%s1706_s14 + $0x760] sm:$0xff]  ;;  %v958_v7 = vmax.f32 %v446_v63, %v702_v0  ;;  %v722_v60 = vld [vmem:[%s1713_s26 + $0x7f8] sm:$0xff] }
 0x113   : > { %1192 = vst [vmem:[%s1728_s20 + $0x6a8] sm:$0xff] %v936_v5  ;;  %v448_v5 = vld [vmem:[%s1706_s14 + $0x768] sm:$0xff]  ;;  %v959_v10 = vmax.f32 %v447_v2, %v703_v3 }
 0x114   : > { %1193 = vst [vmem:[%s1728_s20 + $0x6b0] sm:$0xff] %v937_v8  ;;  %v449_v8 = vld [vmem:[%s1706_s14 + $0x770] sm:$0xff]  ;;  %v960_v13 = vmax.f32 %v448_v5, %v704_v6 }
 0x115   : > { %1194 = vst [vmem:[%s1728_s20 + $0x6b8] sm:$0xff] %v938_v11  ;;  %v450_v11 = vld [vmem:[%s1706_s14 + $0x778] sm:$0xff]  ;;  %v961_v16 = vmax.f32 %v449_v8, %v705_v9 }
 0x116   : > { %1195 = vst [vmem:[%s1728_s20 + $0x6c0] sm:$0xff] %v939_v14  ;;  %v451_v14 = vld [vmem:[%s1706_s14 + $0x780] sm:$0xff]  ;;  %v962_v19 = vmax.f32 %v450_v11, %v706_v12 }
 0x117   : > { %1196 = vst [vmem:[%s1728_s20 + $0x6c8] sm:$0xff] %v940_v17  ;;  %v452_v17 = vld [vmem:[%s1706_s14 + $0x788] sm:$0xff]  ;;  %v963_v22 = vmax.f32 %v451_v14, %v707_v15 }
 0x118   : > { %1197 = vst [vmem:[%s1728_s20 + $0x6d0] sm:$0xff] %v941_v20  ;;  %v453_v20 = vld [vmem:[%s1706_s14 + $0x790] sm:$0xff]  ;;  %v964_v25 = vmax.f32 %v452_v17, %v708_v18 }
 0x119   : > { %1198 = vst [vmem:[%s1728_s20 + $0x6d8] sm:$0xff] %v942_v23  ;;  %v454_v23 = vld [vmem:[%s1706_s14 + $0x798] sm:$0xff]  ;;  %v965_v28 = vmax.f32 %v453_v20, %v709_v21 }
 0x11a   : > { %1199 = vst [vmem:[%s1728_s20 + $0x6e0] sm:$0xff] %v943_v26  ;;  %v455_v26 = vld [vmem:[%s1706_s14 + $0x7a0] sm:$0xff]  ;;  %v966_v31 = vmax.f32 %v454_v23, %v710_v24 }
 0x11b   : > { %1200 = vst [vmem:[%s1728_s20 + $0x6e8] sm:$0xff] %v944_v29  ;;  %v456_v29 = vld [vmem:[%s1706_s14 + $0x7a8] sm:$0xff]  ;;  %v967_v34 = vmax.f32 %v455_v26, %v711_v27 }
 0x11c   : > { %1201 = vst [vmem:[%s1728_s20 + $0x6f0] sm:$0xff] %v945_v32  ;;  %v457_v32 = vld [vmem:[%s1706_s14 + $0x7b0] sm:$0xff]  ;;  %v968_v37 = vmax.f32 %v456_v29, %v712_v30 }
 0x11d   : > { %1202 = vst [vmem:[%s1728_s20 + $0x6f8] sm:$0xff] %v946_v35  ;;  %v458_v35 = vld [vmem:[%s1706_s14 + $0x7b8] sm:$0xff]  ;;  %v969_v40 = vmax.f32 %v457_v32, %v713_v33 }
 0x11e   : > { %1203 = vst [vmem:[%s1728_s20 + $0x700] sm:$0xff] %v947_v38  ;;  %v459_v38 = vld [vmem:[%s1706_s14 + $0x7c0] sm:$0xff]  ;;  %v970_v43 = vmax.f32 %v458_v35, %v714_v36 }
 0x11f   : > { %1204 = vst [vmem:[%s1728_s20 + $0x708] sm:$0xff] %v948_v41  ;;  %v460_v41 = vld [vmem:[%s1706_s14 + $0x7c8] sm:$0xff]  ;;  %v971_v46 = vmax.f32 %v459_v38, %v715_v39 }
 0x120   : > { %1205 = vst [vmem:[%s1728_s20 + $0x710] sm:$0xff] %v949_v44  ;;  %v461_v44 = vld [vmem:[%s1706_s14 + $0x7d0] sm:$0xff]  ;;  %v972_v49 = vmax.f32 %v460_v41, %v716_v42 }
 0x121   : > { %1206 = vst [vmem:[%s1728_s20 + $0x718] sm:$0xff] %v950_v47  ;;  %v462_v47 = vld [vmem:[%s1706_s14 + $0x7d8] sm:$0xff]  ;;  %v973_v52 = vmax.f32 %v461_v44, %v717_v45 }
 0x122   : > { %1207 = vst [vmem:[%s1728_s20 + $0x720] sm:$0xff] %v951_v50  ;;  %v463_v50 = vld [vmem:[%s1706_s14 + $0x7e0] sm:$0xff]  ;;  %v974_v55 = vmax.f32 %v462_v47, %v718_v48 }
 0x123   : > { %1208 = vst [vmem:[%s1728_s20 + $0x728] sm:$0xff] %v952_v53  ;;  %v464_v53 = vld [vmem:[%s1706_s14 + $0x7e8] sm:$0xff]  ;;  %v975_v58 = vmax.f32 %v463_v50, %v719_v51 }
 0x124   : > { %1209 = vst [vmem:[%s1728_s20 + $0x730] sm:$0xff] %v953_v56  ;;  %v465_v56 = vld [vmem:[%s1706_s14 + $0x7f0] sm:$0xff]  ;;  %v976_v61 = vmax.f32 %v464_v53, %v720_v54 }
 0x125   : > { %1210 = vst [vmem:[%s1728_s20 + $0x738] sm:$0xff] %v954_v59  ;;  %v466_v59 = vld [vmem:[%s1706_s14 + $0x7f8] sm:$0xff] }
 0x126   : > { %1211 = vst [vmem:[%s1728_s20 + $0x740] sm:$0xff] %v955_v62  ;;  %v977_v62 = vmax.f32 %v465_v56, %v721_v57  ;;  %v978_v63 = vmax.f32 %v466_v59, %v722_v60 }
 0x127   : > { %1212 = vst [vmem:[%s1728_s20 + $0x748] sm:$0xff] %v956_v1 }
 0x128   : > { %1213 = vst [vmem:[%s1728_s20 + $0x750] sm:$0xff] %v957_v4 }
 0x129   : > { %1214 = vst [vmem:[%s1728_s20 + $0x758] sm:$0xff] %v958_v7 }
 0x12a   : > { %1215 = vst [vmem:[%s1728_s20 + $0x760] sm:$0xff] %v959_v10 }
 0x12b   : > { %1216 = vst [vmem:[%s1728_s20 + $0x768] sm:$0xff] %v960_v13 }
 0x12c   : > { %1217 = vst [vmem:[%s1728_s20 + $0x770] sm:$0xff] %v961_v16 }
 0x12d   : > { %1218 = vst [vmem:[%s1728_s20 + $0x778] sm:$0xff] %v962_v19 }
 0x12e   : > { %1219 = vst [vmem:[%s1728_s20 + $0x780] sm:$0xff] %v963_v22 }
 0x12f   : > { %1220 = vst [vmem:[%s1728_s20 + $0x788] sm:$0xff] %v964_v25 }
 0x130   : > { %1221 = vst [vmem:[%s1728_s20 + $0x790] sm:$0xff] %v965_v28 }
 0x131   : > { %1222 = vst [vmem:[%s1728_s20 + $0x798] sm:$0xff] %v966_v31 }
 0x132   : > { %1223 = vst [vmem:[%s1728_s20 + $0x7a0] sm:$0xff] %v967_v34 }
 0x133   : > { %1224 = vst [vmem:[%s1728_s20 + $0x7a8] sm:$0xff] %v968_v37 }
 0x134   : > { %1225 = vst [vmem:[%s1728_s20 + $0x7b0] sm:$0xff] %v969_v40 }
 0x135   : > { %1226 = vst [vmem:[%s1728_s20 + $0x7b8] sm:$0xff] %v970_v43 }
 0x136   : > { %1227 = vst [vmem:[%s1728_s20 + $0x7c0] sm:$0xff] %v971_v46 }
 0x137   : > { %1228 = vst [vmem:[%s1728_s20 + $0x7c8] sm:$0xff] %v972_v49 }
 0x138   : > { %1229 = vst [vmem:[%s1728_s20 + $0x7d0] sm:$0xff] %v973_v52 }
 0x139   : > { %1230 = vst [vmem:[%s1728_s20 + $0x7d8] sm:$0xff] %v974_v55 }
 0x13a   : > { %1231 = vst [vmem:[%s1728_s20 + $0x7e0] sm:$0xff] %v975_v58 }
 0x13b   : > { %1232 = vst [vmem:[%s1728_s20 + $0x7e8] sm:$0xff] %v976_v61 }
 0x13c   : > { %1233 = vst [vmem:[%s1728_s20 + $0x7f0] sm:$0xff] %v977_v62 }
 0x13d   : > { %1234 = vst [vmem:[%s1728_s20 + $0x7f8] sm:$0xff] %v978_v63 }
 0x13e   : > { %1517 = shalt.err (!%p1514_p13)
}
 0x13f   : > { %s1564_s23 = smov 4096   ;;  %s1565_s7 = smov 256  }
 0x140   : > { %1379 = dma.vmem_to_hbm [thread:$0]  (%p1630_p10), %s1250_s16, 32768, %s1252_s17, %s1236_s19, %s1564_s23, %s1564_s23, %s1565_s7  }
 0x141 PF: > { %p1393_p0 = scmp.ge.s32.totalorder %s1560_s12, 2  ;;  %s1266_s14 = sand.u32 1, %s1548_s9  }
 0x142   : > { %s1267_s4 = scalar_lea.sflag [#allocation4], %s1266_s14 }
 0x143   : > { %p1389_p4 = pnand %p1393_p0, %p1634_p11 }
 0x145   : > { %p1390_p5 = pneg %p1389_p4 }
 0x147   : > { %1543 = dma.done.wait (%p1390_p5), %s1267_s4, 32768  }
 0x148   : > { %1545 = vsyncadd (%p1390_p5), %s1267_s4, 4294934528  ;;  %p18_p7 = scmp.ge.s32.totalorder %s1606_s15, 6   ;;  %s2531_s9 = smov %s1552_s10 }
 0x149   : > { %s2532_s10 = smov %s1556_s11  ;;  %s2533_s11 = smov %s1618_s18 }
 0x14a   : > { %s2534_s12 = smov %s1606_s15  ;;  %20 = sbr.rel (!%p18_p7) target bundleno = 7 (0x7), region = 86 }
 0x14f   :  { %1273 = vsyncpa [#allocation3], 1 }
 0x150   :  { %1275 = vsyncpa [#allocation3 + $0x1], 1 }
 0x151   :  { %1276 = vsyncpa [#allocation6], 1 }
 0x152   :  { %1278 = vsyncpa [#allocation6 + $0x1], 1 }
 0x153   :  { %1279 = vsyncpa [#allocation4], 1 }
 0x154   :  { %1281 = vsyncpa [#allocation4 + $0x1], 1 }

</bundles_post_ra>
